<compile_context>
chip_gen: v7x
topology: tpu7x:2x2x1
jax: 0.10.0
libtpu: 0.0.40
codegen_flags: <defaults>
</compile_context>

<pallas_src>
import math
from functools import partial

import jax
import jax.numpy as jnp
from jax import lax
from jax.experimental import pallas as pl
from jax.experimental.pallas import tpu as pltpu


MASK_SENTINEL = -1e30   # finite stand-in for -inf (identical softmax for normal rows, no NaN)


# ----------------------------- in-kernel helpers -----------------------------

def _layernorm(x, gamma, beta, eps=1e-5):
    # torch reference: mean / biased var over last dim, then gamma * xhat + beta.
    # rsqrt runs on the EUP slot (frees the VALU).
    mean = jnp.mean(x, axis=-1, keepdims=True)
    var = jnp.mean(jnp.square(x - mean), axis=-1, keepdims=True)
    return gamma * ((x - mean) * lax.rsqrt(var + eps)) + beta


# ------------------------------ encoder-layer kernel -------------------------

def _encoder_layer_kernel(head_count,
                          x_ref, maskb_ref,
                          wqkv_ref, bqkv_ref, wo_ref, bo_ref,
                          g1_ref, be1_ref,
                          w1_ref, b1_ref, w2_ref, b2_ref,
                          g2_ref, be2_ref,
                          out_ref):
    f32, bf16 = jnp.float32, jnp.bfloat16

    x = x_ref[...]                      # (M, D) f32, M = tb * S (batch folded into rows)
    M, D = x.shape
    S = maskb_ref.shape[0]
    TB = M // S
    H = head_count
    hd = D // H

    # ---- fused QKV projection: one (M, D) @ (D, 3D) bf16 MXU pass, f32 accumulation ----
    qkv = jnp.dot(x.astype(bf16), wqkv_ref[...],
                  preferred_element_type=f32) + bqkv_ref[...]

    # Softmax scale applied to q (M*D elements) instead of the (H*TB, S, S) scores.
    q = qkv[:, :D] * (1.0 / math.sqrt(hd))
    k = qkv[:, D:2 * D]
    v = qkv[:, 2 * D:]

    # ---- head split: O(H) lane slices + one leading-axis concat per tensor --------------
    # The batch fold (M -> TB, S) is a pure sublane-tile reshape; only the head axis needs a
    # relayout, and its cost no longer grows with the number of folded batch elements.
    # TODO(synk): at real model sizes use hd as a multiple of 128 (lane-aligned slices) and
    # cast to bf16 before this relayout to halve the moved bytes.
    def split_heads(t2d):               # (M, D) -> (H*TB, S, hd), leading axis ordered (h, b)
        t3 = t2d.reshape(TB, S, D)
        return jnp.concatenate(
            [t3[:, :, h * hd:(h + 1) * hd] for h in range(H)], axis=0)

    qh = split_heads(q).astype(bf16)
    kh = split_heads(k).astype(bf16)
    vh = split_heads(v).astype(bf16)

    # ---- attention: ONE batched MXU contraction over every (head, batch-element) --------
    s = jnp.einsum('bqd,bkd->bqk', qh, kh, preferred_element_type=f32)   # (H*TB, S, S) f32
    s = s + maskb_ref[...].astype(f32)[None, :, :]   # additive mask bias: one VALU add

    # softmax in f32; EUP reciprocal for the denominator
    s = s - jnp.max(s, axis=-1, keepdims=True)
    p = jnp.exp(s)
    p = p * pl.reciprocal(jnp.sum(p, axis=-1, keepdims=True), approx=True)

    ctx = jnp.einsum('bqk,bkd->bqd', p.astype(bf16), vh,
                     preferred_element_type=f32)                          # (H*TB, S, hd)
    # TODO(synk): for long sequences stream this section over KV blocks with an online
    # softmax so the live score tile is (H*TB, tq, tk) instead of (H*TB, S, S).

    # ---- head merge: one lane concat, then a single (M, D) @ (D, D) Wo matmul -----------
    ctx3 = ctx.reshape(H, M, hd)        # (h, b*S+s, d): leading-dim reshape only
    attn_in = jnp.concatenate([ctx3[h] for h in range(H)], axis=-1)       # (M, D), (h, d) lanes
    attn = jnp.dot(attn_in.astype(bf16), wo_ref[...],
                   preferred_element_type=f32) + bo_ref[...]

    # EncoderLayer residual structure (faithful to the PyTorch source, which adds the
    # input twice):  norm1(_input + (input + attn))  ==  norm1(2*x + attn)
    y = _layernorm(2.0 * x + attn, g1_ref[...], be1_ref[...])

    # PositionwiseFeedForward: Linear -> ReLU -> (dropout = identity) -> Linear
    h1 = jnp.dot(y.astype(bf16), w1_ref[...], preferred_element_type=f32) + b1_ref[...]
    h1 = jnp.maximum(h1, 0.0)
    ff = jnp.dot(h1.astype(bf16), w2_ref[...], preferred_element_type=f32) + b2_ref[...]

    # norm2(y + ffn(y))
    out_ref[...] = _layernorm(y + ff, g2_ref[...], be2_ref[...])


# ------------------------------ wrapper ---------------------------------------

def _choose_block_b(batch, seq_len, head_count, target_rows=512, score_budget_bytes=8 << 20):
    """Batch elements folded into each grid step.

    Prefer >= 2 grid steps (v7x has two TensorCores to feed), keep the live
    (H*tb, S, S) f32 score tensor under a VMEM budget, then pick the divisor of
    `batch` whose folded row count tb*seq_len is closest to `target_rows`
    (multiple of 256: fills the MXU pipeline, amortizes ~0.35us/step overhead)."""
    best = None
    for tb in range(1, batch + 1):
        if batch % tb:
            continue
        rows = tb * seq_len
        score_bytes = tb * head_count * seq_len * seq_len * 4
        key = (batch // tb < 2, score_bytes > score_budget_bytes, abs(rows - target_rows))
        if best is None or key < best[1]:
            best = (tb, key)
    return best[0]


def encoder_layer(x, mask, params, head_count, block_b=None):
    """Pallas forward pass of EncoderLayer.  x: (B, S, D) f32, mask: (S, S)."""
    B, S, D = x.shape
    assert D % head_count == 0
    tb = _choose_block_b(B, S, head_count) if block_b is None else block_b
    assert B % tb == 0

    # Fold batch into the matmul M dimension: the kernel sees (tb*S, D) row slabs.
    x2d = x.reshape(B * S, D).astype(jnp.float32)
    # Precomputed additive mask bias (bf16: pure structure, half the VMEM of f32).
    mask_bias = jnp.where(mask == 0, MASK_SENTINEL, 0.0).astype(jnp.bfloat16)

    weights = (params["wqkv"], params["bqkv"], params["wo"], params["bo"],
               params["g1"], params["be1"],
               params["w1"], params["b1"], params["w2"], params["b2"],
               params["g2"], params["be2"])

    def resident():
        # Whole-array, VMEM-resident operand: constant across grid steps, so it is not
        # pushed through the double-buffered pipeline.  Weights are bf16 to halve residency.
        return pl.BlockSpec(memory_space=pltpu.MemorySpace.VMEM)

    # Scoped-VMEM limit: resident weights + pipelined activation blocks + live score tensor.
    block_bytes = tb * S * D * 4
    resident_bytes = mask_bias.size * mask_bias.dtype.itemsize + sum(
        w.size * w.dtype.itemsize for w in weights)
    score_bytes = tb * head_count * S * S * 4
    vmem_limit = int(min(max(resident_bytes + 6 * block_bytes + 4 * score_bytes + (8 << 20),
                             32 << 20), 128 << 20))

    grid_spec = pltpu.PrefetchScalarGridSpec(
        num_scalar_prefetch=0,
        grid=(B // tb,),
        in_specs=[pl.BlockSpec((tb * S, D), lambda i: (i, 0)),   # x rows (pipelined)
                  resident()]                                    # additive mask bias
                 + [resident() for _ in weights],                # weights / biases / LN params
        out_specs=pl.BlockSpec((tb * S, D), lambda i: (i, 0)),
    )

    out2d = pl.pallas_call(
        partial(_encoder_layer_kernel, head_count),
        out_shape=jax.ShapeDtypeStruct((B * S, D), jnp.float32),
        grid_spec=grid_spec,
        compiler_params=pltpu.CompilerParams(
            dimension_semantics=("parallel",),     # batch blocks are independent
            vmem_limit_bytes=vmem_limit),
    )(x2d, mask_bias, *weights)
    return out2d.reshape(B, S, D)


# ------------------------------ params & plain-JAX reference ------------------

def init_params(key, embedding_dim, head_count, ffn_hidden_dim):
    D, F = embedding_dim, ffn_hidden_dim
    ks = jax.random.split(key, 12)

    def lin(k, din, dout):
        # stored pre-transposed (in, out); bf16 so the MXU runs native bf16 matmuls
        return (jax.random.normal(k, (din, dout), jnp.float32) / math.sqrt(din)
                ).astype(jnp.bfloat16)

    def bias(k, dout):
        return 0.1 * jax.random.normal(k, (1, dout), jnp.float32)

    return dict(
        # fused QKV projection: (D, 3D) bf16 weight, (1, 3D) f32 bias
        wqkv=jnp.concatenate([lin(ks[0], D, D), lin(ks[1], D, D), lin(ks[2], D, D)], axis=1),
        bqkv=jnp.concatenate([bias(ks[3], D), bias(ks[4], D), bias(ks[5], D)], axis=1),
        wo=lin(ks[6], D, D), bo=bias(ks[7], D),
        g1=jnp.ones((1, D), jnp.float32), be1=jnp.zeros((1, D), jnp.float32),
        w1=lin(ks[8], D, F), b1=bias(ks[9], F),
        w2=lin(ks[10], F, D), b2=bias(ks[11], D),
        g2=jnp.ones((1, D), jnp.float32), be2=jnp.zeros((1, D), jnp.float32),
    )


def encoder_layer_ref(x, mask, p, head_count):
    """Plain-JAX reference with the SAME mixed-precision policy as the kernel
    (bf16 matmul operands, f32 accumulation) so the structural check is tight."""
    B, S, D = x.shape
    H = head_count
    hd = D // H
    f32, bf16 = jnp.float32, jnp.bfloat16

    def mm(a, w):
        return jnp.dot(a.astype(bf16), w.astype(bf16), preferred_element_type=f32)

    mask_bias = jnp.where(mask == 0, MASK_SENTINEL, 0.0).astype(bf16).astype(f32)

    qkv = mm(x, p["wqkv"]) + p["bqkv"][0]
    q = qkv[..., :D] / math.sqrt(hd)
    k, v = qkv[..., D:2 * D], qkv[..., 2 * D:]

    def heads(t):  # (B, S, D) -> (B, H, S, hd)
        return t.reshape(B, S, H, hd).transpose(0, 2, 1, 3)

    s = jnp.einsum('bhqd,bhkd->bhqk', heads(q).astype(bf16), heads(k).astype(bf16),
                   preferred_element_type=f32)
    s = s + mask_bias
    pa = jax.nn.softmax(s, axis=-1)
    ctx = jnp.einsum('bhqk,bhkd->bhqd', pa.astype(bf16), heads(v).astype(bf16),
                     preferred_element_type=f32)
    attn = mm(ctx.transpose(0, 2, 1, 3).reshape(B, S, D), p["wo"]) + p["bo"][0]

    def ln(t, g, b, eps=1e-5):
        m = t.mean(-1, keepdims=True)
        var = jnp.square(t - m).mean(-1, keepdims=True)
        return g[0] * (t - m) / jnp.sqrt(var + eps) + b[0]

    y = ln(2.0 * x + attn, p["g1"], p["be1"])
    ff = mm(jnp.maximum(mm(y, p["w1"]) + p["b1"][0], 0.0), p["w2"]) + p["b2"][0]
    return ln(y + ff, p["g2"], p["be2"])


# ------------------------------------ main ------------------------------------

if __name__ == "__main__":
    batch, seq_len = 4, 8
    embedding_dim, head_count, ffn_hidden_dim = 32, 4, 64

    key = jax.random.PRNGKey(0)
    k_x, k_p = jax.random.split(key)

    x = jax.random.normal(k_x, (batch, seq_len, embedding_dim), jnp.float32)
    # causal (lower-triangular) src_mask: positions with mask == 0 are not attended to
    src_mask = jnp.tril(jnp.ones((seq_len, seq_len), jnp.float32))

    params = init_params(k_p, embedding_dim, head_count, ffn_hidden_dim)

    out = encoder_layer(x, src_mask, params, head_count)
    out = jax.block_until_ready(out)

    assert out.shape == (batch, seq_len, embedding_dim)
    assert bool(jnp.all(jnp.isfinite(out)))

    ref = encoder_layer_ref(x, src_mask, params, head_count)
    max_err = float(jnp.max(jnp.abs(out - ref)))
    assert bool(jnp.allclose(out, ref, rtol=5e-2, atol=5e-2)), max_err

    print("KERNEL_OK")
</pallas_src>

<mosaic_0001>
module attributes {stable_mosaic.version = 11 : i64} {
  func.func @_encoder_layer_kernel(%arg0: i32, %arg1: memref<16x32xf32, #tpu.memory_space<vmem>>, %arg2: memref<8x8xbf16, #tpu.memory_space<vmem>>, %arg3: memref<32x96xbf16, #tpu.memory_space<vmem>>, %arg4: memref<1x96xf32, #tpu.memory_space<vmem>>, %arg5: memref<32x32xbf16, #tpu.memory_space<vmem>>, %arg6: memref<1x32xf32, #tpu.memory_space<vmem>>, %arg7: memref<1x32xf32, #tpu.memory_space<vmem>>, %arg8: memref<1x32xf32, #tpu.memory_space<vmem>>, %arg9: memref<32x64xbf16, #tpu.memory_space<vmem>>, %arg10: memref<1x64xf32, #tpu.memory_space<vmem>>, %arg11: memref<64x32xbf16, #tpu.memory_space<vmem>>, %arg12: memref<1x32xf32, #tpu.memory_space<vmem>>, %arg13: memref<1x32xf32, #tpu.memory_space<vmem>>, %arg14: memref<1x32xf32, #tpu.memory_space<vmem>>, %arg15: memref<16x32xf32, #tpu.memory_space<vmem>>) attributes {dimension_semantics = [#tpu.dimension_semantics<parallel>], iteration_bounds = array<i64: 2>, scalar_prefetch = 0 : i64, scratch_operands = 0 : i64, tpu.core_type = #tpu.core_type<tc>, window_params = [{transform_indices = @transform_0, window_bounds = array<i64: 16, 32>}, {pipeline_mode = #tpu.pipeline_mode<synchronous>, transform_indices = @transform_1, window_bounds = array<i64: 8, 8>}, {pipeline_mode = #tpu.pipeline_mode<synchronous>, transform_indices = @transform_2, window_bounds = array<i64: 32, 96>}, {pipeline_mode = #tpu.pipeline_mode<synchronous>, transform_indices = @transform_3, window_bounds = array<i64: 1, 96>}, {pipeline_mode = #tpu.pipeline_mode<synchronous>, transform_indices = @transform_4, window_bounds = array<i64: 32, 32>}, {pipeline_mode = #tpu.pipeline_mode<synchronous>, transform_indices = @transform_5, window_bounds = array<i64: 1, 32>}, {pipeline_mode = #tpu.pipeline_mode<synchronous>, transform_indices = @transform_6, window_bounds = array<i64: 1, 32>}, {pipeline_mode = #tpu.pipeline_mode<synchronous>, transform_indices = @transform_7, window_bounds = array<i64: 1, 32>}, {pipeline_mode = #tpu.pipeline_mode<synchronous>, transform_indices = @transform_8, window_bounds = array<i64: 32, 64>}, {pipeline_mode = #tpu.pipeline_mode<synchronous>, transform_indices = @transform_9, window_bounds = array<i64: 1, 64>}, {pipeline_mode = #tpu.pipeline_mode<synchronous>, transform_indices = @transform_10, window_bounds = array<i64: 64, 32>}, {pipeline_mode = #tpu.pipeline_mode<synchronous>, transform_indices = @transform_11, window_bounds = array<i64: 1, 32>}, {pipeline_mode = #tpu.pipeline_mode<synchronous>, transform_indices = @transform_12, window_bounds = array<i64: 1, 32>}, {pipeline_mode = #tpu.pipeline_mode<synchronous>, transform_indices = @transform_13, window_bounds = array<i64: 1, 32>}, {transform_indices = @transform_14, window_bounds = array<i64: 16, 32>}]} {
    %c0 = arith.constant 0 : index
    %c0_0 = arith.constant 0 : index
    %0 = vector.load %arg1[%c0, %c0_0] : memref<16x32xf32, #tpu.memory_space<vmem>>, vector<16x32xf32>
    %1 = arith.truncf %0 : vector<16x32xf32> to vector<16x32xbf16>
    %c0_1 = arith.constant 0 : index
    %c0_2 = arith.constant 0 : index
    %2 = vector.load %arg3[%c0_1, %c0_2] : memref<32x96xbf16, #tpu.memory_space<vmem>>, vector<32x96xbf16>
    %cst = arith.constant dense<0.000000e+00> : vector<16x96xf32>
    %3 = tpu.matmul %1, %2, %cst {dimension_numbers = #tpu.dot_dimension_numbers<[1], [0], [0], [1], [0, 0, 1, 1], [], []>} : vector<16x32xbf16>, vector<32x96xbf16>, vector<16x96xf32> -> vector<16x96xf32>
    %c0_3 = arith.constant 0 : index
    %c0_4 = arith.constant 0 : index
    %4 = vector.load %arg4[%c0_3, %c0_4] : memref<1x96xf32, #tpu.memory_space<vmem>>, vector<1x96xf32>
    %5 = vector.broadcast %4 : vector<1x96xf32> to vector<16x96xf32>
    %6 = arith.addf %3, %5 : vector<16x96xf32>
    %7 = vector.extract_strided_slice %6 {offsets = [0, 0], sizes = [16, 32], strides = [1, 1]} : vector<16x96xf32> to vector<16x32xf32>
    %cst_5 = arith.constant 0.353553385 : f32
    %8 = vector.broadcast %cst_5 : f32 to vector<16x32xf32>
    %9 = arith.mulf %7, %8 : vector<16x32xf32>
    %10 = vector.extract_strided_slice %6 {offsets = [0, 32], sizes = [16, 32], strides = [1, 1]} : vector<16x96xf32> to vector<16x32xf32>
    %11 = vector.extract_strided_slice %6 {offsets = [0, 64], sizes = [16, 32], strides = [1, 1]} : vector<16x96xf32> to vector<16x32xf32>
    %12 = vector.shape_cast %9 : vector<16x32xf32> to vector<2x8x32xf32>
    %13 = vector.extract_strided_slice %12 {offsets = [0, 0, 0], sizes = [2, 8, 8], strides = [1, 1, 1]} : vector<2x8x32xf32> to vector<2x8x8xf32>
    %14 = vector.extract_strided_slice %12 {offsets = [0, 0, 8], sizes = [2, 8, 8], strides = [1, 1, 1]} : vector<2x8x32xf32> to vector<2x8x8xf32>
    %15 = vector.extract_strided_slice %12 {offsets = [0, 0, 16], sizes = [2, 8, 8], strides = [1, 1, 1]} : vector<2x8x32xf32> to vector<2x8x8xf32>
    %16 = vector.extract_strided_slice %12 {offsets = [0, 0, 24], sizes = [2, 8, 8], strides = [1, 1, 1]} : vector<2x8x32xf32> to vector<2x8x8xf32>
    %17 = tpu.concatenate %13, %14, %15, %16 in 0 : vector<2x8x8xf32>, vector<2x8x8xf32>, vector<2x8x8xf32>, vector<2x8x8xf32> -> vector<8x8x8xf32>
    %18 = arith.truncf %17 : vector<8x8x8xf32> to vector<8x8x8xbf16>
    %19 = vector.shape_cast %10 : vector<16x32xf32> to vector<2x8x32xf32>
    %20 = vector.extract_strided_slice %19 {offsets = [0, 0, 0], sizes = [2, 8, 8], strides = [1, 1, 1]} : vector<2x8x32xf32> to vector<2x8x8xf32>
    %21 = vector.extract_strided_slice %19 {offsets = [0, 0, 8], sizes = [2, 8, 8], strides = [1, 1, 1]} : vector<2x8x32xf32> to vector<2x8x8xf32>
    %22 = vector.extract_strided_slice %19 {offsets = [0, 0, 16], sizes = [2, 8, 8], strides = [1, 1, 1]} : vector<2x8x32xf32> to vector<2x8x8xf32>
    %23 = vector.extract_strided_slice %19 {offsets = [0, 0, 24], sizes = [2, 8, 8], strides = [1, 1, 1]} : vector<2x8x32xf32> to vector<2x8x8xf32>
    %24 = tpu.concatenate %20, %21, %22, %23 in 0 : vector<2x8x8xf32>, vector<2x8x8xf32>, vector<2x8x8xf32>, vector<2x8x8xf32> -> vector<8x8x8xf32>
    %25 = arith.truncf %24 : vector<8x8x8xf32> to vector<8x8x8xbf16>
    %26 = vector.shape_cast %11 : vector<16x32xf32> to vector<2x8x32xf32>
    %27 = vector.extract_strided_slice %26 {offsets = [0, 0, 0], sizes = [2, 8, 8], strides = [1, 1, 1]} : vector<2x8x32xf32> to vector<2x8x8xf32>
    %28 = vector.extract_strided_slice %26 {offsets = [0, 0, 8], sizes = [2, 8, 8], strides = [1, 1, 1]} : vector<2x8x32xf32> to vector<2x8x8xf32>
    %29 = vector.extract_strided_slice %26 {offsets = [0, 0, 16], sizes = [2, 8, 8], strides = [1, 1, 1]} : vector<2x8x32xf32> to vector<2x8x8xf32>
    %30 = vector.extract_strided_slice %26 {offsets = [0, 0, 24], sizes = [2, 8, 8], strides = [1, 1, 1]} : vector<2x8x32xf32> to vector<2x8x8xf32>
    %31 = tpu.concatenate %27, %28, %29, %30 in 0 : vector<2x8x8xf32>, vector<2x8x8xf32>, vector<2x8x8xf32>, vector<2x8x8xf32> -> vector<8x8x8xf32>
    %32 = arith.truncf %31 : vector<8x8x8xf32> to vector<8x8x8xbf16>
    "tpu.trace_start"() <{level = 10 : i32, message = "bqd,bkd->bqk"}> : () -> ()
    %cst_6 = arith.constant dense<0.000000e+00> : vector<8x8x8xf32>
    %33 = tpu.matmul %18, %25, %cst_6 {dimension_numbers = #tpu.dot_dimension_numbers<[2], [2], [1], [1], [0, 0, 0, 1, 1, 1], [0], [0]>} : vector<8x8x8xbf16>, vector<8x8x8xbf16>, vector<8x8x8xf32> -> vector<8x8x8xf32>
    "tpu.trace_stop"() : () -> ()
    %c0_7 = arith.constant 0 : index
    %c0_8 = arith.constant 0 : index
    %34 = vector.load %arg2[%c0_7, %c0_8] : memref<8x8xbf16, #tpu.memory_space<vmem>>, vector<8x8xbf16>
    %35 = arith.extf %34 : vector<8x8xbf16> to vector<8x8xf32>
    %36 = vector.shape_cast %35 : vector<8x8xf32> to vector<1x8x8xf32>
    %37 = vector.broadcast %36 : vector<1x8x8xf32> to vector<8x8x8xf32>
    %38 = arith.addf %33, %37 : vector<8x8x8xf32>
    %cst_9 = arith.constant dense<0xFF800000> : vector<8x8xf32>
    %39 = vector.multi_reduction <maximumf>, %38, %cst_9 [2] : vector<8x8x8xf32> to vector<8x8xf32>
    %40 = vector.shape_cast %39 : vector<8x8xf32> to vector<8x8x1xf32>
    %41 = vector.broadcast %40 : vector<8x8x1xf32> to vector<8x8x8xf32>
    %42 = arith.subf %38, %41 : vector<8x8x8xf32>
    %43 = math.exp %42 : vector<8x8x8xf32>
    %cst_10 = arith.constant dense<0.000000e+00> : vector<8x8xf32>
    %44 = vector.multi_reduction <add>, %43, %cst_10 [2] : vector<8x8x8xf32> to vector<8x8xf32>
    %45 = vector.shape_cast %44 : vector<8x8xf32> to vector<8x8x1xf32>
    %46 = tpu.reciprocal %45 {approx = true} : vector<8x8x1xf32> -> vector<8x8x1xf32>
    %47 = vector.broadcast %46 : vector<8x8x1xf32> to vector<8x8x8xf32>
    %48 = arith.mulf %43, %47 : vector<8x8x8xf32>
    %49 = arith.truncf %48 : vector<8x8x8xf32> to vector<8x8x8xbf16>
    "tpu.trace_start"() <{level = 10 : i32, message = "bqk,bkd->bqd"}> : () -> ()
    %cst_11 = arith.constant dense<0.000000e+00> : vector<8x8x8xf32>
    %50 = tpu.matmul %49, %32, %cst_11 {dimension_numbers = #tpu.dot_dimension_numbers<[2], [1], [1], [2], [0, 0, 0, 1, 1, 2], [0], [0]>} : vector<8x8x8xbf16>, vector<8x8x8xbf16>, vector<8x8x8xf32> -> vector<8x8x8xf32>
    "tpu.trace_stop"() : () -> ()
    %51 = vector.shape_cast %50 : vector<8x8x8xf32> to vector<4x16x8xf32>
    %52 = vector.extract_strided_slice %51 {offsets = [0, 0, 0], sizes = [1, 16, 8], strides = [1, 1, 1]} : vector<4x16x8xf32> to vector<1x16x8xf32>
    %53 = vector.shape_cast %52 : vector<1x16x8xf32> to vector<16x8xf32>
    %54 = vector.extract_strided_slice %51 {offsets = [1, 0, 0], sizes = [1, 16, 8], strides = [1, 1, 1]} : vector<4x16x8xf32> to vector<1x16x8xf32>
    %55 = vector.shape_cast %54 : vector<1x16x8xf32> to vector<16x8xf32>
    %56 = vector.extract_strided_slice %51 {offsets = [2, 0, 0], sizes = [1, 16, 8], strides = [1, 1, 1]} : vector<4x16x8xf32> to vector<1x16x8xf32>
    %57 = vector.shape_cast %56 : vector<1x16x8xf32> to vector<16x8xf32>
    %58 = vector.extract_strided_slice %51 {offsets = [3, 0, 0], sizes = [1, 16, 8], strides = [1, 1, 1]} : vector<4x16x8xf32> to vector<1x16x8xf32>
    %59 = vector.shape_cast %58 : vector<1x16x8xf32> to vector<16x8xf32>
    %60 = tpu.concatenate %53, %55, %57, %59 in 1 : vector<16x8xf32>, vector<16x8xf32>, vector<16x8xf32>, vector<16x8xf32> -> vector<16x32xf32>
    %61 = arith.truncf %60 : vector<16x32xf32> to vector<16x32xbf16>
    %c0_12 = arith.constant 0 : index
    %c0_13 = arith.constant 0 : index
    %62 = vector.load %arg5[%c0_12, %c0_13] : memref<32x32xbf16, #tpu.memory_space<vmem>>, vector<32x32xbf16>
    %cst_14 = arith.constant dense<0.000000e+00> : vector<16x32xf32>
    %63 = tpu.matmul %61, %62, %cst_14 {dimension_numbers = #tpu.dot_dimension_numbers<[1], [0], [0], [1], [0, 0, 1, 1], [], []>} : vector<16x32xbf16>, vector<32x32xbf16>, vector<16x32xf32> -> vector<16x32xf32>
    %c0_15 = arith.constant 0 : index
    %c0_16 = arith.constant 0 : index
    %64 = vector.load %arg6[%c0_15, %c0_16] : memref<1x32xf32, #tpu.memory_space<vmem>>, vector<1x32xf32>
    %65 = vector.broadcast %64 : vector<1x32xf32> to vector<16x32xf32>
    %66 = arith.addf %63, %65 : vector<16x32xf32>
    %cst_17 = arith.constant 2.000000e+00 : f32
    %67 = vector.broadcast %cst_17 : f32 to vector<16x32xf32>
    %68 = arith.mulf %67, %0 : vector<16x32xf32>
    %69 = arith.addf %68, %66 : vector<16x32xf32>
    %c0_18 = arith.constant 0 : index
    %c0_19 = arith.constant 0 : index
    %70 = vector.load %arg7[%c0_18, %c0_19] : memref<1x32xf32, #tpu.memory_space<vmem>>, vector<1x32xf32>
    %c0_20 = arith.constant 0 : index
    %c0_21 = arith.constant 0 : index
    %71 = vector.load %arg8[%c0_20, %c0_21] : memref<1x32xf32, #tpu.memory_space<vmem>>, vector<1x32xf32>
    %cst_22 = arith.constant dense<0.000000e+00> : vector<16xf32>
    %72 = vector.multi_reduction <add>, %69, %cst_22 [1] : vector<16x32xf32> to vector<16xf32>
    %73 = vector.shape_cast %72 : vector<16xf32> to vector<16x1xf32>
    %cst_23 = arith.constant 3.200000e+01 : f32
    %74 = vector.broadcast %cst_23 : f32 to vector<16x1xf32>
    %75 = arith.divf %73, %74 : vector<16x1xf32>
    %76 = vector.broadcast %75 : vector<16x1xf32> to vector<16x32xf32>
    %77 = arith.subf %69, %76 : vector<16x32xf32>
    %78 = arith.mulf %77, %77 : vector<16x32xf32>
    %cst_24 = arith.constant dense<0.000000e+00> : vector<16xf32>
    %79 = vector.multi_reduction <add>, %78, %cst_24 [1] : vector<16x32xf32> to vector<16xf32>
    %80 = vector.shape_cast %79 : vector<16xf32> to vector<16x1xf32>
    %cst_25 = arith.constant 3.200000e+01 : f32
    %81 = vector.broadcast %cst_25 : f32 to vector<16x1xf32>
    %82 = arith.divf %80, %81 : vector<16x1xf32>
    %83 = vector.broadcast %75 : vector<16x1xf32> to vector<16x32xf32>
    %84 = arith.subf %69, %83 : vector<16x32xf32>
    %cst_26 = arith.constant 9.99999974E-6 : f32
    %85 = vector.broadcast %cst_26 : f32 to vector<16x1xf32>
    %86 = arith.addf %82, %85 : vector<16x1xf32>
    %87 = math.rsqrt %86 : vector<16x1xf32>
    %88 = vector.broadcast %87 : vector<16x1xf32> to vector<16x32xf32>
    %89 = arith.mulf %84, %88 : vector<16x32xf32>
    %90 = vector.broadcast %70 : vector<1x32xf32> to vector<16x32xf32>
    %91 = arith.mulf %90, %89 : vector<16x32xf32>
    %92 = vector.broadcast %71 : vector<1x32xf32> to vector<16x32xf32>
    %93 = arith.addf %91, %92 : vector<16x32xf32>
    %94 = arith.truncf %93 : vector<16x32xf32> to vector<16x32xbf16>
    %c0_27 = arith.constant 0 : index
    %c0_28 = arith.constant 0 : index
    %95 = vector.load %arg9[%c0_27, %c0_28] : memref<32x64xbf16, #tpu.memory_space<vmem>>, vector<32x64xbf16>
    %cst_29 = arith.constant dense<0.000000e+00> : vector<16x64xf32>
    %96 = tpu.matmul %94, %95, %cst_29 {dimension_numbers = #tpu.dot_dimension_numbers<[1], [0], [0], [1], [0, 0, 1, 1], [], []>} : vector<16x32xbf16>, vector<32x64xbf16>, vector<16x64xf32> -> vector<16x64xf32>
    %c0_30 = arith.constant 0 : index
    %c0_31 = arith.constant 0 : index
    %97 = vector.load %arg10[%c0_30, %c0_31] : memref<1x64xf32, #tpu.memory_space<vmem>>, vector<1x64xf32>
    %98 = vector.broadcast %97 : vector<1x64xf32> to vector<16x64xf32>
    %99 = arith.addf %96, %98 : vector<16x64xf32>
    %cst_32 = arith.constant 0.000000e+00 : f32
    %100 = vector.broadcast %cst_32 : f32 to vector<16x64xf32>
    %101 = arith.maximumf %99, %100 : vector<16x64xf32>
    %102 = arith.truncf %101 : vector<16x64xf32> to vector<16x64xbf16>
    %c0_33 = arith.constant 0 : index
    %c0_34 = arith.constant 0 : index
    %103 = vector.load %arg11[%c0_33, %c0_34] : memref<64x32xbf16, #tpu.memory_space<vmem>>, vector<64x32xbf16>
    %cst_35 = arith.constant dense<0.000000e+00> : vector<16x32xf32>
    %104 = tpu.matmul %102, %103, %cst_35 {dimension_numbers = #tpu.dot_dimension_numbers<[1], [0], [0], [1], [0, 0, 1, 1], [], []>} : vector<16x64xbf16>, vector<64x32xbf16>, vector<16x32xf32> -> vector<16x32xf32>
    %c0_36 = arith.constant 0 : index
    %c0_37 = arith.constant 0 : index
    %105 = vector.load %arg12[%c0_36, %c0_37] : memref<1x32xf32, #tpu.memory_space<vmem>>, vector<1x32xf32>
    %106 = vector.broadcast %105 : vector<1x32xf32> to vector<16x32xf32>
    %107 = arith.addf %104, %106 : vector<16x32xf32>
    %108 = arith.addf %93, %107 : vector<16x32xf32>
    %c0_38 = arith.constant 0 : index
    %c0_39 = arith.constant 0 : index
    %109 = vector.load %arg13[%c0_38, %c0_39] : memref<1x32xf32, #tpu.memory_space<vmem>>, vector<1x32xf32>
    %c0_40 = arith.constant 0 : index
    %c0_41 = arith.constant 0 : index
    %110 = vector.load %arg14[%c0_40, %c0_41] : memref<1x32xf32, #tpu.memory_space<vmem>>, vector<1x32xf32>
    %cst_42 = arith.constant dense<0.000000e+00> : vector<16xf32>
    %111 = vector.multi_reduction <add>, %108, %cst_42 [1] : vector<16x32xf32> to vector<16xf32>
    %112 = vector.shape_cast %111 : vector<16xf32> to vector<16x1xf32>
    %cst_43 = arith.constant 3.200000e+01 : f32
    %113 = vector.broadcast %cst_43 : f32 to vector<16x1xf32>
    %114 = arith.divf %112, %113 : vector<16x1xf32>
    %115 = vector.broadcast %114 : vector<16x1xf32> to vector<16x32xf32>
    %116 = arith.subf %108, %115 : vector<16x32xf32>
    %117 = arith.mulf %116, %116 : vector<16x32xf32>
    %cst_44 = arith.constant dense<0.000000e+00> : vector<16xf32>
    %118 = vector.multi_reduction <add>, %117, %cst_44 [1] : vector<16x32xf32> to vector<16xf32>
    %119 = vector.shape_cast %118 : vector<16xf32> to vector<16x1xf32>
    %cst_45 = arith.constant 3.200000e+01 : f32
    %120 = vector.broadcast %cst_45 : f32 to vector<16x1xf32>
    %121 = arith.divf %119, %120 : vector<16x1xf32>
    %122 = vector.broadcast %114 : vector<16x1xf32> to vector<16x32xf32>
    %123 = arith.subf %108, %122 : vector<16x32xf32>
    %cst_46 = arith.constant 9.99999974E-6 : f32
    %124 = vector.broadcast %cst_46 : f32 to vector<16x1xf32>
    %125 = arith.addf %121, %124 : vector<16x1xf32>
    %126 = math.rsqrt %125 : vector<16x1xf32>
    %127 = vector.broadcast %126 : vector<16x1xf32> to vector<16x32xf32>
    %128 = arith.mulf %123, %127 : vector<16x32xf32>
    %129 = vector.broadcast %109 : vector<1x32xf32> to vector<16x32xf32>
    %130 = arith.mulf %129, %128 : vector<16x32xf32>
    %131 = vector.broadcast %110 : vector<1x32xf32> to vector<16x32xf32>
    %132 = arith.addf %130, %131 : vector<16x32xf32>
    %c0_47 = arith.constant 0 : index
    %c0_48 = arith.constant 0 : index
    %133 = vector.load %arg15[%c0_47, %c0_48] : memref<16x32xf32, #tpu.memory_space<vmem>>, vector<16x32xf32>
    tpu.vector_store %arg15[%c0_47, %c0_48], %132 {strides = array<i32>} : memref<16x32xf32, #tpu.memory_space<vmem>>, vector<16x32xf32>,
    return
  }
  func.func @transform_0(%arg0: i32) -> (i32, i32) {
    %c0_i32 = arith.constant 0 : i32
    %c0_i32_0 = arith.constant 0 : i32
    return %arg0, %c0_i32 : i32, i32
  }
  func.func @transform_1(%arg0: i32) -> (i32, i32) {
    %c0_i32 = arith.constant 0 : i32
    %c0_i32_0 = arith.constant 0 : i32
    %c0_i32_1 = arith.constant 0 : i32
    return %c0_i32, %c0_i32_0 : i32, i32
  }
  func.func @transform_2(%arg0: i32) -> (i32, i32) {
    %c0_i32 = arith.constant 0 : i32
    %c0_i32_0 = arith.constant 0 : i32
    %c0_i32_1 = arith.constant 0 : i32
    return %c0_i32, %c0_i32_0 : i32, i32
  }
  func.func @transform_3(%arg0: i32) -> (i32, i32) {
    %c0_i32 = arith.constant 0 : i32
    %c0_i32_0 = arith.constant 0 : i32
    %c0_i32_1 = arith.constant 0 : i32
    return %c0_i32, %c0_i32_0 : i32, i32
  }
  func.func @transform_4(%arg0: i32) -> (i32, i32) {
    %c0_i32 = arith.constant 0 : i32
    %c0_i32_0 = arith.constant 0 : i32
    %c0_i32_1 = arith.constant 0 : i32
    return %c0_i32, %c0_i32_0 : i32, i32
  }
  func.func @transform_5(%arg0: i32) -> (i32, i32) {
    %c0_i32 = arith.constant 0 : i32
    %c0_i32_0 = arith.constant 0 : i32
    %c0_i32_1 = arith.constant 0 : i32
    return %c0_i32, %c0_i32_0 : i32, i32
  }
  func.func @transform_6(%arg0: i32) -> (i32, i32) {
    %c0_i32 = arith.constant 0 : i32
    %c0_i32_0 = arith.constant 0 : i32
    %c0_i32_1 = arith.constant 0 : i32
    return %c0_i32, %c0_i32_0 : i32, i32
  }
  func.func @transform_7(%arg0: i32) -> (i32, i32) {
    %c0_i32 = arith.constant 0 : i32
    %c0_i32_0 = arith.constant 0 : i32
    %c0_i32_1 = arith.constant 0 : i32
    return %c0_i32, %c0_i32_0 : i32, i32
  }
  func.func @transform_8(%arg0: i32) -> (i32, i32) {
    %c0_i32 = arith.constant 0 : i32
    %c0_i32_0 = arith.constant 0 : i32
    %c0_i32_1 = arith.constant 0 : i32
    return %c0_i32, %c0_i32_0 : i32, i32
  }
  func.func @transform_9(%arg0: i32) -> (i32, i32) {
    %c0_i32 = arith.constant 0 : i32
    %c0_i32_0 = arith.constant 0 : i32
    %c0_i32_1 = arith.constant 0 : i32
    return %c0_i32, %c0_i32_0 : i32, i32
  }
  func.func @transform_10(%arg0: i32) -> (i32, i32) {
    %c0_i32 = arith.constant 0 : i32
    %c0_i32_0 = arith.constant 0 : i32
    %c0_i32_1 = arith.constant 0 : i32
    return %c0_i32, %c0_i32_0 : i32, i32
  }
  func.func @transform_11(%arg0: i32) -> (i32, i32) {
    %c0_i32 = arith.constant 0 : i32
    %c0_i32_0 = arith.constant 0 : i32
    %c0_i32_1 = arith.constant 0 : i32
    return %c0_i32, %c0_i32_0 : i32, i32
  }
  func.func @transform_12(%arg0: i32) -> (i32, i32) {
    %c0_i32 = arith.constant 0 : i32
    %c0_i32_0 = arith.constant 0 : i32
    %c0_i32_1 = arith.constant 0 : i32
    return %c0_i32, %c0_i32_0 : i32, i32
  }
  func.func @transform_13(%arg0: i32) -> (i32, i32) {
    %c0_i32 = arith.constant 0 : i32
    %c0_i32_0 = arith.constant 0 : i32
    %c0_i32_1 = arith.constant 0 : i32
    return %c0_i32, %c0_i32_0 : i32, i32
  }
  func.func @transform_14(%arg0: i32) -> (i32, i32) {
    %c0_i32 = arith.constant 0 : i32
    %c0_i32_0 = arith.constant 0 : i32
    return %arg0, %c0_i32 : i32, i32
  }
}

</mosaic_0001>

<bundles_post_ra>
// kernel: tpu_custom_call.1
= control target key start
LH: loop header
LB: loop body
LE: loop exit
PB: predicated region body
PF: predicated region fallthrough
CT: control target
= control target key end

     0   :  { %s3116_s0 = inlined_call_operand.vmem [shape: f32[32,32], index: 0, kind: input, shape index: {}]   ;;  %s3117_s1 = inlined_call_operand.hbm [shape: bf16[8,8], index: 1, kind: input, shape index: {}]   ;;  %s3118_s2 = inlined_call_operand.vmem [shape: bf16[32,96], index: 2, kind: input, shape index: {}]   ;;  %s3119_s3 = inlined_call_operand.vmem [shape: f32[1,96], index: 3, kind: input, shape index: {}]   ;;  %s3120_s4 = inlined_call_operand.hbm [shape: bf16[32,32], index: 4, kind: input, shape index: {}]   ;;  %s3121_s5 = inlined_call_operand.vmem [shape: f32[1,32], index: 5, kind: input, shape index: {}]   ;;  %s3122_s6 = inlined_call_operand.vmem [shape: f32[1,32], index: 6, kind: input, shape index: {}]   ;;  %s3123_s7 = inlined_call_operand.vmem [shape: f32[1,32], index: 7, kind: input, shape index: {}]   ;;  %s3124_s8 = inlined_call_operand.hbm [shape: bf16[32,64], index: 8, kind: input, shape index: {}]   ;;  %s3125_s9 = inlined_call_operand.vmem [shape: f32[1,64], index: 9, kind: input, shape index: {}]   ;;  %s3126_s10 = inlined_call_operand.vmem [shape: bf16[64,32], index: 10, kind: input, shape index: {}]   ;;  %s3127_s11 = inlined_call_operand.vmem [shape: f32[1,32], index: 11, kind: input, shape index: {}]   ;;  %s3128_s12 = inlined_call_operand.vmem [shape: f32[1,32], index: 12, kind: input, shape index: {}]   ;;  %s3129_s13 = inlined_call_operand.vmem [shape: f32[1,32], index: 13, kind: input, shape index: {}]   ;;  %s3130_s14 = inlined_call_operand.hbm [shape: f32[32,32], index: 14, kind: output, shape index: {}]  }
   0x1   :  { %3143 = sst [smem:[#allocation19_spill]] %s3128_s12 }
   0x2   :  { %3144 = sst [smem:[#allocation20_spill]] %s3129_s13 }
   0x3   :  { %3145 = sst [smem:[#allocation21_spill]] %s3130_s14 }
   0x4   :  { %19 = vsyncpa [#allocation3], 0 }
   0x5   :  { %20 = vsyncpa [#allocation6], 0 }
   0x6   :  { %21 = vsyncpa [#allocation4], 0 }
   0x7   :  { %23 = vsyncpa [#allocation4 + $0x1], 0  ;;  %s2637_s29 = smov 0   ;;  %s2639_s30 = smov 0  }
   0x8   :  { %s2641_s15 = smov 0   ;;  %s2643_s16 = smov 0  }
   0x9 LB: > { %3146 = sst [smem:[#allocation12_spill]] %s2531_s29  ;;  %s2658_s17 = sadd.s32 4294967295, %s2543_s16   ;;  %s2543_s16 = sphi %s2643_s16, %s3172_s16   ;;  %s2539_s15 = sphi %s2641_s15, %s3177_s15   ;;  %s2535_s30 = sphi %s2639_s30, %s3176_s30   ;;  %s2531_s29 = sphi %s2637_s29, %s3175_s29  }
   0xa   : > { %3147 = sst [smem:[#allocation13_spill]] %s2539_s15  ;;  %s1976_s18 = sadd.s32 4294967294, %s2543_s16  }
   0xb   : > { %3148 = sst [smem:[#allocation14_spill]] %s2543_s16  ;;  %s2662_s19 = sadd.s32 1, %s2543_s16  }
   0xc   : > { %3149 = sst [smem:[#allocation15_spill]] %s2662_s19  ;;  %s335_s20 = sadd.s32 1, %s2539_s15 }
   0xd   : > { %s332_s21 = ssub.s32 %s2543_s16, %s2662_s19  ;;  %p345_p0 = scmp.ne.s32.totalorder %s2539_s15, %s2535_s30 }
   0xe   : > { %p333_p1 = scmp.eq.s32.totalorder %s332_s21, 0  ;;  %p346_p2 = scmp.eq.s32.totalorder %s2658_s17, 1 }
   0xf   : > { %p351_p3 = scmp.ne.s32.totalorder %s2535_s30, %s2531_s29  ;;  %p352_p4 = scmp.eq.s32.totalorder %s1976_s18, 1 }
  0x10   : > { %s2673_s22 = scalar_select %p333_p1, %s2539_s15, %s335_s20  }
  0x11   : > { %p2675_p5 = por %p346_p2, %p345_p0  ;;  %p2679_p6 = por %p352_p4, %p351_p3 }
  0x12   : > { %3150 = sst [smem:[#allocation16_spill]] %s2673_s22  ;;  %p1977_p7 = scmp.ge.s32.totalorder %s2543_s16, 1 }
  0x13   : > { %s3151_s23 = scalar_select %p2675_p5, 1, 0 }
  0x14   : > { %s3153_s24 = scalar_select %p2679_p6, 1, 0 }
  0x15   : > { %3152 = sst [smem:[#allocation17_spill]] %s3151_s23  ;;  %p359_p8 = scmp.lt.s32.totalorder %s2543_s16, 3 }
  0x16   : > { %3154 = sst [smem:[#allocation18_spill]] %s3153_s24  ;;  %p3137_p9 = scmp.eq.s32.totalorder %s2658_s17, 0 }
  0x17   : > { %p2686_p10 = pnand %p1977_p7, %p359_p8  ;;  %s2545_s26 = smov [#allocation5]  }
  0x18   : > { %s388_s27 = sshll.u32 %s2545_s26, 4  ;;  %s2546_s18 = smov [#allocation2]   ;;  %s2692_s27 = int_to_ptr.vmem [resolvable:$true] %s388_s27 }
  0x19   : > { %s3155_s25 = scalar_select %p2686_p10, 1, 0 }
  0x1a   : > { %p2225_p11 = pneg %p2686_p10  ;;  %s372_s20 = sshll.u32 %s2546_s18, 4  ;;  %s2700_s20 = int_to_ptr.vmem [resolvable:$true] %s372_s20 }
  0x1b   : > { %s2547_s21 = smov [#allocation7]   ;;  %s2389_s26 = scalar_lea.hbm %s3120_s4, 256 }
  0x1c   : > { %p2696_p12 = pnand %p3137_p9, %p2225_p11  ;;  %s2702_s22 = sshll.u32 %s2547_s21, 4  ;;  %s411_s22 = int_to_ptr.vmem [resolvable:$true] %s2702_s22 }
  0x1d   : > { %p2390_p13 = scmp.ne.s32.totalorder %s3120_s4, %s2389_s26  ;;  %p2396_p3 = scmp.lt.u32.totalorder %s2389_s26, %s3120_s4 }
  0x1e   : > { %p2712_p0 = pneg %p2696_p12 }
  0x20   : > { %p2392_p1 = pnand %p2712_p0, %p2390_p13 }
  0x22   : > { %p2393_p2 = pneg %p2392_p1 }
  0x24   : > { %p2398_p4 = pnand %p2396_p3, %p2393_p2 }
  0x26   : > { %2401 = shalt.err (!%p2398_p4)
}
  0x27   : > { %s2402_s29 = scalar_lea.vmem %s2692_s27, 256  ;;  %p2410_p9 = scmp.lt.s32.totalorder %s2692_s27, %s2692_s27 }
  0x28   : > { %p2403_p7 = scmp.ne.s32.totalorder %s2692_s27, %s2402_s29  ;;  %p2411_p6 = scmp.lt.s32.totalorder %s2402_s29, %s2402_s29 }
  0x2a   : > { %p2405_p8 = pnand %p2403_p7, %p2712_p0  ;;  %p2412_p13 = por %p2411_p6, %p2410_p9 }
  0x2c   : > { %p2406_p11 = pneg %p2405_p8 }
  0x2e   : > { %p2413_p1 = pnand %p2412_p13, %p2406_p11 }
  0x30   : > { %2416 = shalt.err (!%p2413_p1)
}
  0x31   : > { %s2548_s15 = smov 64   ;;  %s2549_s19 = smov 4  }
  0x32   : > { %2231 = dma.hbm_to_vmem [thread:$0]  (!%p2696_p12), %s3120_s4, 256, %s2692_s27, [#allocation6], %s2548_s15, %s2548_s15, %s2549_s19  }
  0x33   : > { %s2417_s29 = scalar_lea.hbm %s3117_s1, 64 }
  0x34   : > { %p2418_p6 = scmp.ne.s32.totalorder %s3117_s1, %s2417_s29  ;;  %p2424_p3 = scmp.lt.u32.totalorder %s2417_s29, %s3117_s1 }
  0x36   : > { %p2420_p9 = pnand %p2418_p6, %p2712_p0 }
  0x38   : > { %p2421_p2 = pneg %p2420_p9 }
  0x3a   : > { %p2426_p4 = pnand %p2424_p3, %p2421_p2 }
  0x3c   : > { %2429 = shalt.err (!%p2426_p4)
}
  0x3d   : > { %s2430_s27 = scalar_lea.vmem %s2700_s20, 64  ;;  %p2438_p13 = scmp.lt.s32.totalorder %s2700_s20, %s2700_s20 }
  0x3e   : > { %p2431_p7 = scmp.ne.s32.totalorder %s2700_s20, %s2430_s27  ;;  %p2439_p1 = scmp.lt.s32.totalorder %s2430_s27, %s2430_s27 }
  0x40   : > { %p2433_p8 = pnand %p2431_p7, %p2712_p0  ;;  %p2440_p6 = por %p2439_p1, %p2438_p13 }
  0x42   : > { %p2434_p11 = pneg %p2433_p8 }
  0x44   : > { %p2441_p9 = pnand %p2440_p6, %p2434_p11 }
  0x46   : > { %2444 = shalt.err (!%p2441_p9)
}
  0x47   : > { %2228 = dma.hbm_to_vmem [thread:$0]  (!%p2696_p12), %s3117_s1, 64, %s2700_s20, [#allocation3]  }
  0x48   : > { %s2445_s24 = scalar_lea.hbm %s3124_s8, 256 }
  0x49   : > { %p2446_p2 = scmp.ne.s32.totalorder %s3124_s8, %s2445_s24  ;;  %p2452_p7 = scmp.lt.u32.totalorder %s2445_s24, %s3124_s8 }
  0x4b   : > { %p2448_p3 = pnand %p2446_p2, %p2712_p0 }
  0x4d   : > { %p2449_p4 = pneg %p2448_p3 }
  0x4f   : > { %p2454_p8 = pnand %p2452_p7, %p2449_p4 }
  0x51   : > { %2457 = shalt.err (!%p2454_p8)
}
  0x52   : > { %s2458_s27 = scalar_lea.vmem %s411_s22, 256  ;;  %p2466_p6 = scmp.lt.s32.totalorder %s411_s22, %s411_s22 }
  0x53   : > { %p2459_p11 = scmp.ne.s32.totalorder %s411_s22, %s2458_s27  ;;  %p2467_p9 = scmp.lt.s32.totalorder %s2458_s27, %s2458_s27 }
  0x55   : > { %p2461_p13 = pnand %p2459_p11, %p2712_p0  ;;  %p2468_p5 = por %p2467_p9, %p2466_p6 }
  0x57   : > { %p2462_p1 = pneg %p2461_p13 }
  0x59   : > { %p2469_p10 = pnand %p2468_p5, %p2462_p1 }
  0x5b   : > { %2472 = shalt.err (!%p2469_p10)
}
  0x5c   : > { %2234 = dma.hbm_to_vmem [thread:$0]  (!%p2696_p12), %s3124_s8, 256, %s411_s22, [#allocation6], %s2548_s15, %s2548_s15, %s2549_s19  }
  0x5d   : > { %p3158_p2 = scmp.ne.s32.totalorder %s3155_s25, 0 }
  0x5e   : > { %p3159_p0 = scmp.eq.s32.totalorder (!%p3158_p2), %s2658_s17, 0 }
  0x5f   : > { %450 = sbr.rel (%p3158_p2) target bundleno = 2805 (0xaf5), region = 76 }
  0x66   : > { %2518 = dma.done.wait (%p3159_p0), [#allocation3], 64   ;;  %p3160_p3 = pmov %p3159_p0 }
  0x67   : > { %p3161_p5 = pmov %p3159_p0 }
  0x68   : > { %2520 = vsyncadd (%p3160_p3), [#allocation3], 4294967232 }
  0x69   : > { %2522 = dma.done.wait (%p3161_p5), [#allocation6], 512   ;;  %p3162_p10 = pmov %p3159_p0 }
  0x6a   : > { %s1987_s16 = sshll.u32 %s2658_s17, 1  ;;  %v2550_v0 = vmov 0.0   ;;  %vm2551_vm0 = vmmov 0   ;;  %v2339_v1 = vld [vmem:[%s3118_s2] sm:$0xff]   ;;  %v2340_v2 = vld [vmem:[%s3118_s2 + $0x8] sm:$0xff]   ;;  %vm538_vm1 = vcmask 261120  }
  0x6b   : > { %2524 = vsyncadd (%p3162_p10), [#allocation6], 4294966784  ;;  %2079 = vmatprep.subr.bf16.mxu0 %v2550_v0  ;;  %2083 = vmatprep.mubr.msk.bf16.mxu0 %vm2551_vm0, %v2550_v0  ;;  %p505_p12 = scmp.lt.s32.totalorder %s1987_s16, 3  ;;  %v1989_v6 = vld [vmem:[%s3119_s3] ss:$0 sm:$0xff]  ;;  %s2552_s18 = smov 104  }
  0x6c   : > { %2087 = vmatprep.subr.bf16.mxu1 %v2550_v0  ;;  %2089 = vmatprep.mubr.msk.bf16.mxu1 %vm2551_vm0, %v2550_v0  ;;  %s2553_s21 = smov 120   ;;  %s2554_s29 = smov 96   ;;  %vm646_vm2 = vcmask 64512   ;;  %vm1137_vm3 = vcmask 1043456   ;;  %vm1543_vm4 = vcmask 130048   ;;  %vm1546_vm5 = vcmask 195584  }
  0x6d   : > { %s3179_s16 = smov (!%p505_p12, %s1987_s16), 3  ;;  %2080 = vmatpush3.bf16.msra.mxu0 %v2339_v1  ;;  %s2555_s27 = smov 112   ;;  %vm1776_vm6 = vcmask 523264  }
  0x6e   : > { %s1988_s22 = sshll.u32 %s3179_s16, 3  ;;  %2081 = vmatprep.subr.bf16.mxu0 %v2550_v0  ;;  %s2556_s20 = smov 64  }
  0x6f   : > { %s508_s15 = scalar_lea.vmem %s3116_s0, %s1988_s22  ;;  %s2557_s12 = smov 8  }
  0x70   : > { %v2807_v3 = vld [vmem:[%s508_s15] sm:$0xff]  ;;  %v2809_v4 = vld [vmem:[%s508_s15 + $0x8] sm:$0xff]  ;;  %s2558_s16 = smov 16   ;;  %s2559_s22 = smov 24  }
  0x71   : > { %v514_v5 = vpack.c.bf16 %v2809_v4, %v2807_v3  ;;  %2082 = vmatpush3.bf16.msra.mxu0 %v2340_v2  ;;  %s501_s15 = sand.u32 1, %s2535_s30   ;;  %s3163_s23 = sld [smem:[#allocation19_spill]] }
  0x72   : > { %2093 = vmatprep.subr.bf16.mxu0 %v2550_v0  ;;  %s1986_s19 = sshll.u32 %s501_s15, 4  ;;  %s3166_s25 = sld [smem:[#allocation21_spill]] }
  0x73   : > { %s2560_s13 = smov [#allocation8]  }
  0x74   : > { %2084 = vmatmul.mubr.msk.bf16.vlgmr.msra.gmra.mrb[0].mxu0 %vm538_vm1, %v514_v5  ;;  %s2477_s14 = sshll.u32 %s2560_s13, 4  ;;  %s2478_s14 = int_to_ptr.vmem [resolvable:$false] %s2477_s14 }
  0x75   : > { %2095 = vmatprep.mubr.msk.bf16.mxu0 %vm2551_vm0, %v2550_v0 }
 0x147   : > { %v576_v7 = vpop.f32.mrb[0].mxu0 }
 0x148   : > { %v2085_v8 = vpop.f32.mrb[1].mxu0  ;;  %v577_v9 = vadd.f32 %v1989_v6, %v576_v7 }
 0x149   : > { %v579_v10 = vpop.f32.mrb[2].mxu0  ;;  %v641_v8 = vld [vmem:[#allocation2] sm:$0xf] }
 0x14a   : > { %v580_v11 = vadd.f32 %v1989_v6, %v579_v10  ;;  %v2086_v12 = vpop.f32.mrb[3].mxu0  ;;  %v583_v14 = vmul.f32 0.35355338, %v577_v9  ;;  %v633_v17 = vpack.c.bf16 %v577_v9, %v577_v9 }
 0x14c   : > { %v2304_v13 = vpack.i.bf16 %v580_v11, %v577_v9  ;;  %v584_v15 = vmul.f32 0.35355338, %v580_v11  ;;  %v2825_v18 = vpack.c.bf16 %v580_v11, %v580_v11  ;;  %v605_v34 = vpack.c.bf16 %v583_v14, %v583_v14 }
 0x14d   : > { %v642_v9 = vunpack.c.l.bf16 %v641_v8 }
 0x14e   : > { %2305 = vrot.lane.b32.xlu1 %v2304_v13, %s2552_s18  ;;  %2295 = vrot.lane.b32.xlu0 %v2304_v13, %s2553_s21  ;;  %v2309_v16 = vpack.i.bf16 %v584_v15, %v583_v14  ;;  %v606_v38 = vpack.c.bf16 %v584_v15, %v584_v15 }
 0x152   : > { %644 = vrot.lane.b32.xlu1 %v633_v17, %s2554_s29  ;;  %2300 = vrot.lane.b32.xlu0 %v2304_v13, %s2555_s27 }
 0x156   : > { %694 = vrot.lane.b32.xlu0 %v2825_v18, %s2554_s29 }
 0x1c0   : > { %v2306_v19 = vpop.permute.xlu1 %2305  ;;  %v2296_v20 = vpop.permute.xlu0 %2295 }
 0x1c1   : > { %v2298_v21 = vunpack.i.h.bf16 %v2296_v20  ;;  %v2297_v22 = vunpack.i.l.bf16 %v2296_v20  ;;  %v2308_v33 = vunpack.i.h.bf16 %v2306_v19  ;;  %v2307_v35 = vunpack.i.l.bf16 %v2306_v19 }
 0x1c3   : > { %v2829_v23 = vpack.c.bf16 %v2298_v21, %v2298_v21  ;;  %v2831_v24 = vpack.c.bf16 %v2297_v22, %v2297_v22  ;;  %v2854_v37 = vpack.c.bf16 %v2308_v33, %v2308_v33  ;;  %v2856_v39 = vpack.c.bf16 %v2307_v35, %v2307_v35 }
 0x1c4   : > { %v645_v25 = vpop.permute.xlu1 %644  ;;  %v2301_v26 = vpop.permute.xlu0 %2300 }
 0x1c5   : > { %v2302_v27 = vunpack.i.l.bf16 %v2301_v26  ;;  %743 = vrot.lane.b32.xlu1 %v2831_v24, %s2554_s29  ;;  %792 = vrot.lane.b32.xlu0 %v2829_v23, %s2554_s29  ;;  %v651_v28 = vsel %vm646_vm2, %v645_v25, 0  ;;  %v2303_v30 = vunpack.i.h.bf16 %v2301_v26 }
 0x1c6   : > { %2088 = vmatpush3.bf16.xpose.msra.mxu1 %v651_v28 }
 0x1c7   : > { %v2838_v29 = vpack.c.bf16 %v2302_v27, %v2302_v27  ;;  %2099 = vmatprep.subr.bf16.mxu1 %v2550_v0  ;;  %v2846_v36 = vpack.c.bf16 %v2303_v30, %v2303_v30 }
 0x1c8   : > { %v695_v31 = vpop.permute.xlu0 %694 }
 0x1c9   : > { %v700_v32 = vsel %vm646_vm2, %v695_v31, 0  ;;  %841 = vrot.lane.b32.xlu0 %v2838_v29, %s2554_s29  ;;  %2310 = vrot.lane.b32.xlu1 %v2309_v16, %s2553_s21  ;;  %s3165_s21 = sld [smem:[#allocation17_spill]] }
 0x1ca   : > { %2094 = vmatpush3.bf16.xpose.msra.mxu0 %v700_v32 }
 0x1cb   : > { %2105 = vmatprep.subr.bf16.mxu0 %v2550_v0 }
 0x1cd   : > { %2090 = vmatmul.mubr.msk.bf16.vlgmr.msra.gmra.mrb[0].mxu1 %vm646_vm2, %v605_v34  ;;  %2315 = vrot.lane.b32.xlu0 %v2309_v16, %s2555_s27  ;;  %s503_s27 = scalar_lea.vmem [#allocation8], %s1986_s19 }
 0x1ce   : > { %890 = vrot.lane.b32.xlu1 %v2846_v36, %s2554_s29  ;;  %2101 = vmatprep.mubr.msk.bf16.mxu1 %vm2551_vm0, %v2550_v0 }
 0x1cf   : > { %p3167_p7 = scmp.ne.s32.totalorder %s3165_s21, 0 }
 0x1d1   : > { %988 = vrot.lane.b32.xlu0 %v2854_v37, %s2554_s29  ;;  %2096 = vmatmul.mubr.msk.bf16.vlgmr.msra.gmra.mrb[4].mxu0 %vm646_vm2, %v606_v38 }
 0x1d2   : > { %939 = vrot.lane.b32.xlu1 %v2856_v39, %s2554_s29  ;;  %2107 = vmatprep.mubr.msk.bf16.mxu0 %vm2551_vm0, %v2550_v0  ;;  %s2032_s29 = sshll.u32 %s2658_s17, 8  ;;  %s3074_s17 = scalar_lea.sflag [#allocation4], %s501_s15 }
 0x1d3   : > { %s3068_s28 = scalar_lea.hbm %s3166_s25, %s2032_s29 }
 0x1d6   : > { %2320 = vrot.lane.b32.xlu1 %v2309_v16, %s2552_s18  ;;  %s3164_s18 = sld [smem:[#allocation20_spill]] }
 0x1da   : > { %1132 = vrot.lane.b32.xlu1 %v633_v17, %s2556_s20 }
 0x237   : > { %v744_v40 = vpop.permute.xlu1 %743  ;;  %v793_v41 = vpop.permute.xlu0 %792 }
 0x238   : > { %v749_v42 = vsel %vm646_vm2, %v744_v40, 0  ;;  %v798_v43 = vsel %vm646_vm2, %v793_v41, 0 }
 0x239   : > { %2100 = vmatpush3.bf16.xpose.msra.mxu1 %v749_v42  ;;  %2106 = vmatpush3.bf16.xpose.msra.mxu0 %v798_v43 }
 0x23a   : > { %2111 = vmatprep.subr.bf16.mxu1 %v2550_v0  ;;  %2117 = vmatprep.subr.bf16.mxu0 %v2550_v0 }
 0x23b   : > { %v842_v44 = vpop.permute.xlu0 %841  ;;  %v2311_v45 = vpop.permute.xlu1 %2310 }
 0x23c   : > { %v2313_v46 = vunpack.i.h.bf16 %v2311_v45  ;;  %v2312_v47 = vunpack.i.l.bf16 %v2311_v45  ;;  %v847_v51 = vsel %vm646_vm2, %v842_v44, 0 }
 0x23e   : > { %v608_v48 = vpack.c.bf16 %v2313_v46, %v2313_v46  ;;  %v607_v49 = vpack.c.bf16 %v2312_v47, %v2312_v47 }
 0x23f   : > { %v2316_v50 = vpop.permute.xlu0 %2315 }
 0x240   : > { %v891_v52 = vpop.permute.xlu1 %890  ;;  %2102 = vmatmul.mubr.msk.bf16.vlgmr.msra.gmra.mrb[4].mxu1 %vm646_vm2, %v607_v49  ;;  %2108 = vmatmul.mubr.msk.bf16.vlgmr.msra.gmra.mrb[8].mxu0 %vm646_vm2, %v608_v48  ;;  %v2317_v54 = vunpack.i.l.bf16 %v2316_v50  ;;  %v2318_v55 = vunpack.i.h.bf16 %v2316_v50 }
 0x241   : > { %v896_v53 = vsel %vm646_vm2, %v891_v52, 0  ;;  %2112 = vmatpush3.bf16.xpose.msra.mxu1 %v847_v51  ;;  %2113 = vmatprep.mubr.msk.bf16.mxu1 %vm2551_vm0, %v2550_v0 }
 0x242   : > { %2118 = vmatpush3.bf16.xpose.msra.mxu0 %v896_v53  ;;  %2119 = vmatprep.mubr.msk.bf16.mxu0 %vm2551_vm0, %v2550_v0  ;;  %v609_v57 = vpack.c.bf16 %v2317_v54, %v2317_v54  ;;  %v610_v59 = vpack.c.bf16 %v2318_v55, %v2318_v55 }
 0x243   : > { %2123 = vmatprep.subr.bf16.mxu1 %v2550_v0  ;;  %2129 = vmatprep.subr.bf16.mxu0 %v2550_v0  ;;  %v989_v58 = vpop.permute.xlu0 %988 }
 0x244   : > { %v940_v56 = vpop.permute.xlu1 %939  ;;  %v994_v62 = vsel %vm646_vm2, %v989_v58, 0 }
 0x245   : > { %v945_v60 = vsel %vm646_vm2, %v940_v56, 0 }
 0x248   : > { %v2321_v61 = vpop.permute.xlu1 %2320  ;;  %2114 = vmatmul.mubr.msk.bf16.vlgmr.msra.gmra.mrb[8].mxu1 %vm646_vm2, %v609_v57 }
 0x249   : > { %2120 = vmatmul.mubr.msk.bf16.vlgmr.msra.gmra.mrb[12].mxu0 %vm646_vm2, %v610_v59  ;;  %2124 = vmatpush3.bf16.xpose.msra.mxu1 %v945_v60  ;;  %v2322_v63 = vunpack.i.l.bf16 %v2321_v61  ;;  %v2323_v1 = vunpack.i.h.bf16 %v2321_v61 }
 0x24a   : > { %2130 = vmatpush3.bf16.xpose.msra.mxu0 %v994_v62  ;;  %2125 = vmatprep.mubr.msk.bf16.mxu1 %vm2551_vm0, %v2550_v0 }
 0x24b   : > { %2131 = vmatprep.mubr.msk.bf16.mxu0 %vm2551_vm0, %v2550_v0  ;;  %2135 = vmatprep.subr.bf16.mxu1 %v2550_v0  ;;  %v611_v5 = vpack.c.bf16 %v2322_v63, %v2322_v63  ;;  %v612_v6 = vpack.c.bf16 %v2323_v1, %v2323_v1 }
 0x24c   : > { %2141 = vmatprep.subr.bf16.mxu0 %v2550_v0  ;;  %v1133_v2 = vpop.permute.xlu1 %1132 }
 0x24d   : > { %v1139_v7 = vsel %vm1137_vm3, %v1133_v2, 0 }
 0x250   : > { %2126 = vmatmul.mubr.msk.bf16.vlgmr.msra.gmra.mrb[12].mxu1 %vm646_vm2, %v611_v5 }
 0x251   : > { %2132 = vmatmul.mubr.msk.bf16.vlgmr.msra.gmra.mrb[16].mxu0 %vm646_vm2, %v612_v6  ;;  %2136 = vmatpush3.bf16.msra.mxu1 %v1139_v7 }
 0x252   : > { %2143 = vmatprep.mubr.msk.bf16.mxu0 %vm2551_vm0, %v2550_v0  ;;  %2137 = vmatprep.mubr.msk.bf16.mxu1 %vm2551_vm0, %v2550_v0 }
 0x253   : > { %2147 = vmatprep.subr.bf16.mxu1 %v2550_v0 }
 0x2a0   : > { %v687_v10 = vpop.f32.mrb[0].mxu1 }
 0x2a1   : > { %v2899_v11 = vadd.f32 %v687_v10, %v642_v9  ;;  %v2091_v12 = vpop.f32.mrb[1].mxu1 }
 0x2a2   : > { %v690_v13 = vpop.f32.mrb[2].mxu1 }
 0x2a3   : > { %v2092_v14 = vpop.f32.mrb[3].mxu1  ;;  %v1036_v15 = vsel %vm646_vm2, %v2899_v11, -inf }
 0x2a4   : > { %1037 = vmax.xlane.f32.xlu0 %v1036_v15  ;;  %v736_v16 = vpop.f32.mrb[4].mxu0 }
 0x2a5   : > { %v737_v17 = vadd.f32 %v736_v16, %v642_v9  ;;  %v2097_v19 = vpop.f32.mrb[5].mxu0 }
 0x2a6   : > { %v739_v20 = vpop.f32.mrb[6].mxu0 }
 0x2a7   : > { %v2098_v21 = vpop.f32.mrb[7].mxu0  ;;  %v1039_v22 = vsel %vm646_vm2, %v737_v17, -inf }
 0x2a8   : > { %1040 = vmax.xlane.f32.xlu1 %v1039_v22 }
 0x313   : > { %v785_v25 = vpop.f32.mrb[4].mxu1  ;;  %v834_v26 = vpop.f32.mrb[8].mxu0 }
 0x314   : > { %v786_v27 = vadd.f32 %v785_v25, %v642_v9  ;;  %v2103_v28 = vpop.f32.mrb[5].mxu1  ;;  %v2109_v30 = vpop.f32.mrb[9].mxu0  ;;  %v835_v33 = vadd.f32 %v834_v26, %v642_v9 }
 0x315   : > { %v788_v31 = vpop.f32.mrb[6].mxu1  ;;  %v837_v32 = vpop.f32.mrb[10].mxu0 }
 0x316   : > { %v2104_v34 = vpop.f32.mrb[7].mxu1  ;;  %v2110_v35 = vpop.f32.mrb[11].mxu0  ;;  %v1042_v38 = vsel %vm646_vm2, %v786_v27, -inf  ;;  %v1045_v40 = vsel %vm646_vm2, %v835_v33, -inf }
 0x317   : > { %1043 = vmax.xlane.f32.xlu0 %v1042_v38 }
 0x31b   : > { %v883_v41 = vpop.f32.mrb[8].mxu1  ;;  %1046 = vmax.xlane.f32.xlu0 %v1045_v40 }
 0x31c   : > { %v2906_v42 = vadd.f32 %v883_v41, %v642_v9  ;;  %v932_v43 = vpop.f32.mrb[12].mxu0  ;;  %v2115_v44 = vpop.f32.mrb[9].mxu1 }
 0x31d   : > { %v2908_v45 = vadd.f32 %v932_v43, %v642_v9  ;;  %v2121_v46 = vpop.f32.mrb[13].mxu0  ;;  %v886_v47 = vpop.f32.mrb[10].mxu1 }
 0x31e   : > { %v935_v48 = vpop.f32.mrb[14].mxu0  ;;  %v2116_v49 = vpop.f32.mrb[11].mxu1  ;;  %v1048_v50 = vsel %vm646_vm2, %v2906_v42, -inf }
 0x31f   : > { %v2122_v51 = vpop.f32.mrb[15].mxu0  ;;  %1049 = vmax.xlane.f32.xlu1 %v1048_v50  ;;  %v1051_v52 = vsel %vm646_vm2, %v2908_v45, -inf }
 0x320   : > { %1052 = vmax.xlane.f32.xlu0 %v1051_v52 }
 0x323   : > { %v981_v53 = vpop.f32.mrb[12].mxu1 }
 0x324   : > { %v982_v54 = vadd.f32 %v981_v53, %v642_v9  ;;  %v1030_v55 = vpop.f32.mrb[16].mxu0  ;;  %v2127_v56 = vpop.f32.mrb[13].mxu1 }
 0x325   : > { %v1031_v57 = vadd.f32 %v1030_v55, %v642_v9  ;;  %v2133_v58 = vpop.f32.mrb[17].mxu0  ;;  %v984_v59 = vpop.f32.mrb[14].mxu1 }
 0x326   : > { %v1033_v60 = vpop.f32.mrb[18].mxu0  ;;  %v2128_v61 = vpop.f32.mrb[15].mxu1  ;;  %v1054_v62 = vsel %vm646_vm2, %v982_v54, -inf }
 0x327   : > { %v2134_v63 = vpop.f32.mrb[19].mxu0  ;;  %1055 = vmax.xlane.f32.xlu1 %v1054_v62  ;;  %v1057_v1 = vsel %vm646_vm2, %v1031_v57, -inf }
 0x328   : > { %1058 = vmax.xlane.f32.xlu0 %v1057_v1 }
 0x331   : > { %v1038_v5 = vpop.xlane.xlu0 %1037 }
 0x332   : > { %v1060_v7 = vsub.f32 %v2899_v11, %v1038_v5 }
 0x334   : > { %v1068_v9 = vmul.f32 1.442695, %v1060_v7 }
 0x335   : > { %v1041_v2 = vpop.xlane.xlu1 %1040 }
 0x336   : > { %v1061_v6 = vsub.f32 %v737_v17, %v1041_v2 }
 0x338   : > { %1229 = vrot.lane.b32.xlu1 %v2831_v24, %s2556_s20  ;;  %v1070_v8 = vmul.f32 1.442695, %v1061_v6 }
 0x33a   : > { %2349 = vpow2.f32 %v1070_v8 }
 0x33b   : > { %2351 = vpow2.f32 %v1068_v9 }
 0x33c   : > { %1277 = vrot.lane.b32.xlu1 %v2829_v23, %s2556_s20 }
 0x33e   : > { %1181 = vrot.lane.b32.xlu0 %v2825_v18, %s2556_s20 }
 0x344   : > { %v2350_v10 = vpop.eup %2349 }
 0x345   : > { %v2923_v12 = vpop.eup %2351  ;;  %v1087_v24 = vsel %vm646_vm2, %v2350_v10, 0.0 }
 0x346   : > { %v1084_v23 = vsel %vm646_vm2, %v2923_v12, 0.0 }
 0x35d   : > { %1088 = vadd.xlane.f32.xlu0 %v1087_v24 }
 0x360   : > { %1085 = vadd.xlane.f32.xlu1 %v1084_v23 }
 0x3a4   : > { %v1044_v18 = vpop.xlane.xlu0 %1043 }
 0x3a5   : > { %v1062_v13 = vsub.f32 %v786_v27, %v1044_v18 }
 0x3a7   : > { %v1072_v14 = vmul.f32 1.442695, %v1062_v13 }
 0x3a8   : > { %v1047_v15 = vpop.xlane.xlu0 %1046 }
 0x3a9   : > { %2353 = vpow2.f32 %v1072_v14  ;;  %v1063_v11 = vsub.f32 %v835_v33, %v1047_v15 }
 0x3ab   : > { %v1074_v16 = vmul.f32 1.442695, %v1063_v11 }
 0x3ac   : > { %v1050_v28 = vpop.xlane.xlu1 %1049 }
 0x3ad   : > { %2355 = vpow2.f32 %v1074_v16  ;;  %v1053_v17 = vpop.xlane.xlu0 %1052  ;;  %v1064_v30 = vsub.f32 %v2906_v42, %v1050_v28 }
 0x3ae   : > { %v1065_v32 = vsub.f32 %v2908_v45, %v1053_v17 }
 0x3af   : > { %v1076_v33 = vmul.f32 1.442695, %v1064_v30 }
 0x3b0   : > { %v1078_v35 = vmul.f32 1.442695, %v1065_v32 }
 0x3b1   : > { %2357 = vpow2.f32 %v1076_v33 }
 0x3b2   : > { %2359 = vpow2.f32 %v1078_v35 }
 0x3b3   : > { %v2928_v19 = vpop.eup %2353 }
 0x3b4   : > { %v1090_v20 = vsel %vm646_vm2, %v2928_v19, 0.0  ;;  %v1056_v31 = vpop.xlane.xlu1 %1055 }
 0x3b5   : > { %v1059_v21 = vpop.xlane.xlu0 %1058  ;;  %1091 = vadd.xlane.f32.xlu1 %v1090_v20  ;;  %v1066_v34 = vsub.f32 %v982_v54, %v1056_v31 }
 0x3b6   : > { %v1067_v40 = vsub.f32 %v1031_v57, %v1059_v21 }
 0x3b7   : > { %v2932_v22 = vpop.eup %2355  ;;  %v1080_v38 = vmul.f32 1.442695, %v1066_v34 }
 0x3b8   : > { %v1093_v25 = vsel %vm646_vm2, %v2932_v22, 0.0  ;;  %v1082_v41 = vmul.f32 1.442695, %v1067_v40  ;;  %v1230_v43 = vpop.permute.xlu1 %1229 }
 0x3b9   : > { %v1182_v26 = vpop.permute.xlu0 %1181  ;;  %1094 = vadd.xlane.f32.xlu0 %v1093_v25  ;;  %2361 = vpow2.f32 %v1080_v38  ;;  %v1235_v59 = vsel %vm1137_vm3, %v1230_v43, 0 }
 0x3ba   : > { %v1187_v27 = vsel %vm1137_vm3, %v1182_v26, 0  ;;  %2363 = vpow2.f32 %v1082_v41 }
 0x3bb   : > { %2142 = vmatpush3.bf16.msra.mxu0 %v1187_v27 }
 0x3bc   : > { %2153 = vmatprep.subr.bf16.mxu0 %v2550_v0  ;;  %v1278_v44 = vpop.permute.xlu1 %1277 }
 0x3bd   : > { %v1283_v57 = vsel %vm1137_vm3, %v1278_v44, 0 }
 0x3c6   : > { %1373 = vrot.lane.b32.xlu1 %v2846_v36, %s2556_s20  ;;  %v2944_v36 = vpop.eup %2357 }
 0x3c7   : > { %v1096_v42 = vsel %vm646_vm2, %v2944_v36, 0.0 }
 0x3cf   : > { %1325 = vrot.lane.b32.xlu0 %v2838_v29, %s2556_s20  ;;  %v2946_v29 = vpop.eup %2359 }
 0x3d0   : > { %v2950_v45 = vpop.eup %2361  ;;  %v1099_v49 = vsel %vm646_vm2, %v2946_v29, 0.0 }
 0x3d1   : > { %v1102_v48 = vsel %vm646_vm2, %v2950_v45, 0.0  ;;  %v2956_v50 = vpop.eup %2363 }
 0x3d2   : > { %v1105_v51 = vsel %vm646_vm2, %v2956_v50, 0.0 }
 0x3ea   : > { %v1089_v46 = vpop.xlane.xlu0 %1088  ;;  %1097 = vadd.xlane.f32.xlu1 %v1096_v42 }
 0x3eb   : > { %2365 = vrcp.f32 %v1089_v46 }
 0x3ed   : > { %v1086_v47 = vpop.xlane.xlu1 %1085 }
 0x3ee   : > { %2367 = vrcp.f32 %v1086_v47  ;;  %1103 = vadd.xlane.f32.xlu1 %v1102_v48  ;;  %1100 = vadd.xlane.f32.xlu0 %v1099_v49  ;;  %v2341_v48 = vld [vmem:[#allocation5] sm:$0xff]  }
 0x3f2   : > { %1106 = vadd.xlane.f32.xlu0 %v1105_v51 }
 0x3f5   : > { %v2366_v52 = vpop.eup %2365 }
 0x3f6   : > { %v1117_v53 = vmul.f32 %v2366_v52, %v2350_v10 }
 0x3f8   : > { %v2368_v54 = vpop.eup %2367  ;;  %v1125_v55 = vpack.c.bf16 %v1117_v53, %v1117_v53  ;;  %v2342_v53 = vld [vmem:[#allocation5 + $0x8] sm:$0xff]  }
 0x3f9   : > { %v1116_v56 = vmul.f32 %v2368_v54, %v2923_v12 }
 0x3fa   : > { %2144 = vmatmul.mubr.msk.bf16.vlgmr.msra.gmra.mrb[20].mxu0 %vm646_vm2, %v1125_v55 }
 0x3fb   : > { %2154 = vmatpush3.bf16.msra.mxu0 %v1283_v57  ;;  %v1124_v58 = vpack.c.bf16 %v1116_v56, %v1116_v56  ;;  %2155 = vmatprep.mubr.msk.bf16.mxu0 %vm2551_vm0, %v2550_v0 }
 0x3fc   : > { %2165 = vmatprep.subr.bf16.mxu0 %v2550_v0 }
 0x3fd   : > { %2138 = vmatmul.mubr.msk.bf16.vlgmr.msra.gmra.mrb[16].mxu1 %vm646_vm2, %v1124_v58 }
 0x3fe   : > { %2148 = vmatpush3.bf16.msra.mxu1 %v1235_v59  ;;  %2149 = vmatprep.mubr.msk.bf16.mxu1 %vm2551_vm0, %v2550_v0 }
 0x3ff   : > { %1469 = vrot.lane.b32.xlu1 %v2854_v37, %s2556_s20  ;;  %2159 = vmatprep.subr.bf16.mxu1 %v2550_v0 }
 0x408   : > { %1421 = vrot.lane.b32.xlu0 %v2856_v39, %s2556_s20  ;;  %s1883_s20 = sshll.u32 %s503_s27, 4  ;;  %s3071_s20 = int_to_ptr.vmem [resolvable:$true] %s1883_s20 }
 0x409   : > { %s2473_s19 = scalar_lea.vmem %s3071_s20, 256  ;;  %p2480_p13 = scmp.lt.s32.totalorder %s3071_s20, %s2478_s14 }
 0x40a   : > { %p2474_p4 = scmp.ne.s32.totalorder %s3071_s20, %s2473_s19 }
 0x40c   : > { %p2475_p8 = pnand %p2474_p4, %p3167_p7 }
 0x40e   : > { %p2476_p11 = pneg %p2475_p8 }
 0x442   : > { %v1092_v60 = vpop.xlane.xlu1 %1091 }
 0x443   : > { %2369 = vrcp.f32 %v1092_v60 }
 0x446   : > { %v1095_v61 = vpop.xlane.xlu0 %1094  ;;  %v1374_v37 = vpop.permute.xlu1 %1373 }
 0x447   : > { %2371 = vrcp.f32 %v1095_v61  ;;  %v1379_v8 = vsel %vm1137_vm3, %v1374_v37, 0 }
 0x44a   : > { %v1326_v1 = vpop.permute.xlu0 %1325 }
 0x44b   : > { %v1331_v7 = vsel %vm1137_vm3, %v1326_v1, 0 }
 0x44d   : > { %v2370_v62 = vpop.eup %2369 }
 0x44e   : > { %v1118_v63 = vmul.f32 %v2370_v62, %v2928_v19 }
 0x450   : > { %v1126_v2 = vpack.c.bf16 %v1118_v63, %v1118_v63 }
 0x451   : > { %v2372_v5 = vpop.eup %2371 }
 0x452   : > { %v1119_v6 = vmul.f32 %v2372_v5, %v2932_v22  ;;  %2150 = vmatmul.mubr.msk.bf16.vlgmr.msra.gmra.mrb[20].mxu1 %vm646_vm2, %v1126_v2 }
 0x453   : > { %2160 = vmatpush3.bf16.msra.mxu1 %v1331_v7  ;;  %2161 = vmatprep.mubr.msk.bf16.mxu1 %vm2551_vm0, %v2550_v0 }
 0x454   : > { %v1127_v39 = vpack.c.bf16 %v1119_v6, %v1119_v6  ;;  %2171 = vmatprep.subr.bf16.mxu1 %v2550_v0 }
 0x456   : > { %2156 = vmatmul.mubr.msk.bf16.vlgmr.msra.gmra.mrb[24].mxu0 %vm646_vm2, %v1127_v39 }
 0x457   : > { %2166 = vmatpush3.bf16.msra.mxu0 %v1379_v8  ;;  %2167 = vmatprep.mubr.msk.bf16.mxu0 %vm2551_vm0, %v2550_v0 }
 0x458   : > { %2177 = vmatprep.subr.bf16.mxu0 %v2550_v0 }
 0x477   : > { %v1098_v9 = vpop.xlane.xlu1 %1097 }
 0x478   : > { %2373 = vrcp.f32 %v1098_v9 }
 0x47b   : > { %v1104_v10 = vpop.xlane.xlu1 %1103  ;;  %v1101_v12 = vpop.xlane.xlu0 %1100 }
 0x47c   : > { %2375 = vrcp.f32 %v1104_v10 }
 0x47d   : > { %2377 = vrcp.f32 %v1101_v12 }
 0x47f   : > { %v1107_v24 = vpop.xlane.xlu0 %1106  ;;  %v1470_v20 = vpop.permute.xlu1 %1469 }
 0x480   : > { %2379 = vrcp.f32 %v1107_v24  ;;  %v1475_v25 = vsel %vm1137_vm3, %v1470_v20, 0  ;;  %v1617_v20 = vmul.f32 2.0, %v2807_v3 }
 0x482   : > { %v2374_v23 = vpop.eup %2373 }
 0x483   : > { %v1120_v18 = vmul.f32 %v2374_v23, %v2944_v36  ;;  %v1422_v13 = vpop.permute.xlu0 %1421 }
 0x484   : > { %v1427_v16 = vsel %vm1137_vm3, %v1422_v13, 0 }
 0x485   : > { %v1128_v14 = vpack.c.bf16 %v1120_v18, %v1120_v18 }
 0x486   : > { %v2376_v15 = vpop.eup %2375 }
 0x487   : > { %v2378_v11 = vpop.eup %2377  ;;  %2162 = vmatmul.mubr.msk.bf16.vlgmr.msra.gmra.mrb[24].mxu1 %vm646_vm2, %v1128_v14  ;;  %v1122_v19 = vmul.f32 %v2376_v15, %v2950_v45 }
 0x488   : > { %v1121_v17 = vmul.f32 %v2378_v11, %v2946_v29  ;;  %2172 = vmatpush3.bf16.msra.mxu1 %v1427_v16  ;;  %2173 = vmatprep.mubr.msk.bf16.mxu1 %vm2551_vm0, %v2550_v0 }
 0x489   : > { %2183 = vmatprep.subr.bf16.mxu1 %v2550_v0  ;;  %v1130_v26 = vpack.c.bf16 %v1122_v19, %v1122_v19  ;;  %v2009_v19 = vld [vmem:[%s3121_s5] ss:$0 sm:$0xff] }
 0x48a   : > { %v1129_v21 = vpack.c.bf16 %v1121_v17, %v1121_v17  ;;  %v2380_v22 = vpop.eup %2379 }
 0x48b   : > { %v1123_v27 = vmul.f32 %v2380_v22, %v2956_v50 }
 0x48c   : > { %2168 = vmatmul.mubr.msk.bf16.vlgmr.msra.gmra.mrb[28].mxu0 %vm646_vm2, %v1129_v21 }
 0x48d   : > { %2178 = vmatpush3.bf16.msra.mxu0 %v1475_v25  ;;  %2179 = vmatprep.mubr.msk.bf16.mxu0 %vm2551_vm0, %v2550_v0  ;;  %v1131_v28 = vpack.c.bf16 %v1123_v27, %v1123_v27 }
 0x48e   : > { %2191 = vmatprep.subr.bf16.mxu0 %v2550_v0 }
 0x48f   : > { %2174 = vmatmul.mubr.msk.bf16.vlgmr.msra.gmra.mrb[28].mxu1 %vm646_vm2, %v1130_v26  ;;  %v1618_v26 = vmul.f32 2.0, %v2809_v4 }
 0x490   : > { %2187 = vmatprep.mubr.msk.bf16.mxu1 %vm2551_vm0, %v2550_v0  ;;  %2184 = vmatpush3.bf16.msra.mxu1 %v2341_v48 }
 0x491   : > { %2185 = vmatprep.subr.bf16.mxu1 %v2550_v0 }
 0x494   : > { %2180 = vmatmul.mubr.msk.bf16.vlgmr.msra.gmra.mrb[32].mxu0 %vm646_vm2, %v1131_v28  ;;  %2186 = vmatpush3.bf16.msra.mxu1 %v2342_v53 }
 0x495   : > { %2195 = vmatprep.mubr.msk.bf16.mxu0 %vm2551_vm0, %v2550_v0  ;;  %2199 = vmatprep.subr.bf16.mxu1 %v2550_v0 }
 0x4cd   : > { %v1223_v30 = vpop.f32.mrb[20].mxu0 }
 0x4ce   : > { %v2145_v31 = vpop.f32.mrb[21].mxu0 }
 0x4cf   : > { %v1226_v32 = vpop.f32.mrb[22].mxu0 }
 0x4d0   : > { %v2146_v33 = vpop.f32.mrb[23].mxu0  ;;  %v1175_v34 = vpop.f32.mrb[16].mxu1 }
 0x4d1   : > { %v2139_v35 = vpop.f32.mrb[17].mxu1 }
 0x4d2   : > { %v1178_v38 = vpop.f32.mrb[18].mxu1 }
 0x4d3   : > { %v2140_v40 = vpop.f32.mrb[19].mxu1 }
 0x525   : > { %v1271_v41 = vpop.f32.mrb[20].mxu1 }
 0x526   : > { %v2151_v43 = vpop.f32.mrb[21].mxu1 }
 0x527   : > { %v1274_v36 = vpop.f32.mrb[22].mxu1 }
 0x528   : > { %v2152_v29 = vpop.f32.mrb[23].mxu1 }
 0x529   : > { %v1319_v44 = vpop.f32.mrb[24].mxu0 }
 0x52a   : > { %v2324_v42 = vpack.i.bf16 %v1319_v44, %v1271_v41  ;;  %v2157_v45 = vpop.f32.mrb[25].mxu0 }
 0x52b   : > { %v1322_v46 = vpop.f32.mrb[26].mxu0  ;;  %v2344_v45 = vld [vmem:[#allocation7 + $0x8] sm:$0xff]  }
 0x52c   : > { %2325 = vrot.lane.b32.xlu0 %v2324_v42, %s2557_s12  ;;  %v2158_v47 = vpop.f32.mrb[27].mxu0  ;;  %v2343_v42 = vld [vmem:[#allocation7] sm:$0xff]   ;;  %v2345_v46 = vld [vmem:[%s3126_s10] sm:$0xff]  }
 0x52d   : > { %2192 = vmatpush3.bf16.msra.mxu0 %v2343_v42  ;;  %v2346_v47 = vld [vmem:[%s3126_s10 + $0x8] sm:$0xff]   ;;  %v2026_v42 = vld [vmem:[%s3164_s18] ss:$0 sm:$0xff] }
 0x52e   : > { %2193 = vmatprep.subr.bf16.mxu0 %v2550_v0 }
 0x531   : > { %2194 = vmatpush3.bf16.msra.mxu0 %v2344_v45 }
 0x55a   : > { %v1367_v49 = vpop.f32.mrb[24].mxu1 }
 0x55b   : > { %v2163_v50 = vpop.f32.mrb[25].mxu1 }
 0x55c   : > { %v1370_v51 = vpop.f32.mrb[26].mxu1 }
 0x55d   : > { %v2164_v52 = vpop.f32.mrb[27].mxu1 }
 0x55f   : > { %v1415_v54 = vpop.f32.mrb[28].mxu0 }
 0x560   : > { %v2329_v55 = vpack.i.bf16 %v1415_v54, %v1367_v49  ;;  %v2169_v56 = vpop.f32.mrb[29].mxu0 }
 0x561   : > { %v1418_v57 = vpop.f32.mrb[30].mxu0 }
 0x562   : > { %2330 = vrot.lane.b32.xlu1 %v2329_v55, %s2558_s16  ;;  %v2170_v58 = vpop.f32.mrb[31].mxu0  ;;  %v1463_v59 = vpop.f32.mrb[28].mxu1  ;;  %v2013_v55 = vld [vmem:[%s3122_s6] ss:$0 sm:$0xff] }
 0x563   : > { %v2175_v60 = vpop.f32.mrb[29].mxu1 }
 0x564   : > { %v1466_v61 = vpop.f32.mrb[30].mxu1  ;;  %v2014_v60 = vld [vmem:[%s3123_s7] ss:$0 sm:$0xff] }
 0x565   : > { %v2176_v62 = vpop.f32.mrb[31].mxu1 }
 0x567   : > { %v1511_v63 = vpop.f32.mrb[32].mxu0 }
 0x568   : > { %v2334_v1 = vpack.i.bf16 %v1511_v63, %v1463_v59  ;;  %v2181_v2 = vpop.f32.mrb[33].mxu0 }
 0x569   : > { %v1514_v5 = vpop.f32.mrb[34].mxu0  ;;  %v2347_v2 = vld [vmem:[%s3126_s10 + $0x10] sm:$0xff]  }
 0x56a   : > { %2335 = vrot.lane.b32.xlu0 %v2334_v1, %s2559_s22  ;;  %v2182_v6 = vpop.f32.mrb[35].mxu0  ;;  %v2348_v5 = vld [vmem:[%s3126_s10 + $0x18] sm:$0xff]  }
 0x56b   : > { %v2015_v6 = vld [vmem:[%s3125_s9] ss:$0 sm:$0xff] }
 0x59e   : > { %v2326_v7 = vpop.permute.xlu0 %2325 }
 0x59f   : > { %v2328_v39 = vunpack.i.h.bf16 %v2326_v7  ;;  %v2327_v8 = vunpack.i.l.bf16 %v2326_v7 }
 0x5a1   : > { %v1542_v24 = vsel %vm646_vm2, %v1223_v30, %v2328_v39  ;;  %v1541_v23 = vsel %vm646_vm2, %v1175_v34, %v2327_v8 }
 0x5d4   : > { %v2331_v37 = vpop.permute.xlu1 %2330 }
 0x5d5   : > { %v2333_v9 = vunpack.i.h.bf16 %v2331_v37  ;;  %v2332_v10 = vunpack.i.l.bf16 %v2331_v37 }
 0x5d7   : > { %v1545_v14 = vsel %vm1543_vm4, %v1542_v24, %v2333_v9  ;;  %v1544_v15 = vsel %vm1543_vm4, %v1541_v23, %v2332_v10 }
 0x5dc   : > { %v2336_v12 = vpop.permute.xlu0 %2335 }
 0x5dd   : > { %v2338_v18 = vunpack.i.h.bf16 %v2336_v12  ;;  %v2337_v13 = vunpack.i.l.bf16 %v2336_v12 }
 0x5df   : > { %v1548_v11 = vsel %vm1546_vm5, %v1545_v14, %v2338_v18  ;;  %v1547_v16 = vsel %vm1546_vm5, %v1544_v15, %v2337_v13 }
 0x5e0   : > { %v1549_v17 = vpack.c.bf16 %v1548_v11, %v1547_v16 }
 0x5e2   : > { %2188 = vmatmul.mubr.msk.bf16.vlgmr.msra.gmra.mrb[32].mxu1 %vm538_vm1, %v1549_v17 }
 0x5e3   : > { %2207 = vmatprep.mubr.msk.bf16.mxu1 %vm2551_vm0, %v2550_v0  ;;  %2200 = vmatpush3.bf16.msra.mxu1 %v2345_v46 }
 0x5e4   : > { %2201 = vmatprep.subr.bf16.mxu1 %v2550_v0 }
 0x5e7   : > { %2202 = vmatpush3.bf16.msra.mxu1 %v2346_v47 }
 0x5e8   : > { %2203 = vmatprep.subr.bf16.mxu1 %v2550_v0 }
 0x5eb   : > { %2204 = vmatpush3.bf16.msra.mxu1 %v2347_v2 }
 0x5ec   : > { %2205 = vmatprep.subr.bf16.mxu1 %v2550_v0  ;;  %v2019_v0 = vld [vmem:[%s3127_s11] ss:$0 sm:$0xff] }
 0x5ef   : > { %2206 = vmatpush3.bf16.msra.mxu1 %v2348_v5 }
 0x6b5   : > { %v1610_v21 = vpop.f32.mrb[32].mxu1 }
 0x6b6   : > { %v1611_v22 = vadd.f32 %v2009_v19, %v1610_v21  ;;  %v2189_v25 = vpop.f32.mrb[33].mxu1 }
 0x6b7   : > { %v1613_v27 = vpop.f32.mrb[34].mxu1 }
 0x6b8   : > { %v1614_v28 = vadd.f32 %v2009_v19, %v1613_v27  ;;  %v2190_v30 = vpop.f32.mrb[35].mxu1  ;;  %v1619_v31 = vadd.f32 %v1617_v20, %v1611_v22 }
 0x6ba   : > { %v1623_v32 = vsel %vm538_vm1, %v1619_v31, 0.0  ;;  %v1620_v33 = vadd.f32 %v1618_v26, %v1614_v28 }
 0x6bb   : > { %1624 = vadd.xlane.f32.xlu1 %v1623_v32 }
 0x6bc   : > { %v1626_v34 = vsel %vm538_vm1, %v1620_v33, 0.0 }
 0x6bd   : > { %1627 = vadd.xlane.f32.xlu0 %v1626_v34 }
 0x748   : > { %v1625_v35 = vpop.xlane.xlu1 %1624 }
 0x749   : > { %v1630_v38 = vmul.f32 0.03125, %v1625_v35 }
 0x74a   : > { %v1628_v40 = vpop.xlane.xlu0 %1627 }
 0x74b   : > { %v1632_v3 = vsub.f32 %v1619_v31, %v1630_v38  ;;  %v1631_v41 = vmul.f32 0.03125, %v1628_v40 }
 0x74d   : > { %v1633_v43 = vsub.f32 %v1620_v33, %v1631_v41  ;;  %v1634_v36 = vmul.f32 %v1632_v3, %v1632_v3 }
 0x74f   : > { %v1636_v4 = vsel %vm538_vm1, %v1634_v36, 0.0  ;;  %v1635_v29 = vmul.f32 %v1633_v43, %v1633_v43 }
 0x750   : > { %1637 = vadd.xlane.f32.xlu0 %v1636_v4  ;;  %v2025_v4 = vld [vmem:[%s3163_s23] ss:$0 sm:$0xff]  ;;  %s2479_s23 = scalar_lea.vmem %s2478_s14, 512 }
 0x751   : > { %v1639_v44 = vsel %vm538_vm1, %v1635_v29, 0.0  ;;  %p2481_p1 = scmp.lt.s32.totalorder %s2479_s23, %s2473_s19 }
 0x752   : > { %1640 = vadd.xlane.f32.xlu1 %v1639_v44 }
 0x753   : > { %p2482_p6 = por %p2481_p1, %p2480_p13 }
 0x755   : > { %p2483_p9 = pnand %p2482_p6, %p2476_p11 }
 0x7dd   : > { %v1638_v48 = vpop.xlane.xlu0 %1637 }
 0x7de   : > { %v1642_v49 = vmul.f32 0.03125, %v1638_v48 }
 0x7df   : > { %v1641_v50 = vpop.xlane.xlu1 %1640 }
 0x7e0   : > { %v1644_v51 = vadd.f32 1e-05, %v1642_v49  ;;  %v1643_v52 = vmul.f32 0.03125, %v1641_v50 }
 0x7e2   : > { %2381 = vrsqrt.f32 %v1644_v51  ;;  %v1645_v53 = vadd.f32 1e-05, %v1643_v52 }
 0x7e4   : > { %2383 = vrsqrt.f32 %v1645_v53 }
 0x7ec   : > { %v2382_v54 = vpop.eup %2381 }
 0x7ed   : > { %v1648_v56 = vmul.f32 %v2382_v54, %v1632_v3 }
 0x7ee   : > { %v2384_v57 = vpop.eup %2383 }
 0x7ef   : > { %v1656_v58 = vmul.f32 %v2013_v55, %v1648_v56  ;;  %v1649_v59 = vmul.f32 %v2384_v57, %v1633_v43 }
 0x7f1   : > { %v1657_v61 = vmul.f32 %v2013_v55, %v1649_v59  ;;  %v1664_v62 = vadd.f32 %v2014_v60, %v1656_v58 }
 0x7f3   : > { %v1665_v63 = vadd.f32 %v2014_v60, %v1657_v61 }
 0x7f5   : > { %v1666_v1 = vpack.c.bf16 %v1665_v63, %v1664_v62 }
 0x7f7   : > { %2196 = vmatmul.mubr.msk.bf16.vlgmr.msra.gmra.mrb[36].mxu0 %vm538_vm1, %v1666_v1 }
 0x8ca   : > { %v1727_v7 = vpop.f32.mrb[36].mxu0 }
 0x8cb   : > { %v1728_v37 = vadd.f32 %v2015_v6, %v1727_v7  ;;  %v2197_v39 = vpop.f32.mrb[37].mxu0 }
 0x8cc   : > { %v1730_v8 = vpop.f32.mrb[38].mxu0 }
 0x8cd   : > { %v1731_v9 = vadd.f32 %v2015_v6, %v1730_v8  ;;  %v2198_v10 = vpop.f32.mrb[39].mxu0  ;;  %v1734_v12 = vmax.f32 %v1728_v37, 0.0 }
 0x8cf   : > { %v1735_v24 = vmax.f32 %v1731_v9, 0.0 }
 0x8d1   : > { %v1736_v23 = vpack.c.bf16 %v1735_v24, %v1734_v12 }
 0x8d3   : > { %2208 = vmatmul.mubr.msk.bf16.vlgmr.msra.gmra.mrb[36].mxu1 %vm1776_vm6, %v1736_v23 }
 0x9a6   : > { %v1814_v18 = vpop.f32.mrb[36].mxu1 }
 0x9a7   : > { %v1815_v13 = vadd.f32 %v2019_v0, %v1814_v18  ;;  %v2209_v14 = vpop.f32.mrb[37].mxu1 }
 0x9a8   : > { %v1817_v15 = vpop.f32.mrb[38].mxu1 }
 0x9a9   : > { %v1818_v11 = vadd.f32 %v2019_v0, %v1817_v15  ;;  %v2210_v16 = vpop.f32.mrb[39].mxu1  ;;  %v1821_v17 = vadd.f32 %v1815_v13, %v1664_v62 }
 0x9ab   : > { %v1825_v19 = vsel %vm538_vm1, %v1821_v17, 0.0  ;;  %v1822_v20 = vadd.f32 %v1818_v11, %v1665_v63 }
 0x9ac   : > { %1826 = vadd.xlane.f32.xlu0 %v1825_v19 }
 0x9ad   : > { %v1828_v21 = vsel %vm538_vm1, %v1822_v20, 0.0 }
 0x9ae   : > { %1829 = vadd.xlane.f32.xlu1 %v1828_v21 }
 0xa39   : > { %v1827_v22 = vpop.xlane.xlu0 %1826 }
 0xa3a   : > { %v1831_v25 = vmul.f32 0.03125, %v1827_v22 }
 0xa3b   : > { %v1830_v26 = vpop.xlane.xlu1 %1829 }
 0xa3c   : > { %v1833_v27 = vsub.f32 %v1821_v17, %v1831_v25  ;;  %v1832_v28 = vmul.f32 0.03125, %v1830_v26 }
 0xa3e   : > { %v1834_v30 = vsub.f32 %v1822_v20, %v1832_v28  ;;  %v1835_v31 = vmul.f32 %v1833_v27, %v1833_v27 }
 0xa40   : > { %v1837_v32 = vsel %vm538_vm1, %v1835_v31, 0.0  ;;  %v1836_v33 = vmul.f32 %v1834_v30, %v1834_v30 }
 0xa41   : > { %1838 = vadd.xlane.f32.xlu0 %v1837_v32 }
 0xa42   : > { %v1840_v34 = vsel %vm538_vm1, %v1836_v33, 0.0 }
 0xa43   : > { %1841 = vadd.xlane.f32.xlu1 %v1840_v34 }
 0xace   : > { %v1839_v35 = vpop.xlane.xlu0 %1838 }
 0xacf   : > { %v1843_v38 = vmul.f32 0.03125, %v1839_v35 }
 0xad0   : > { %v1842_v40 = vpop.xlane.xlu1 %1841 }
 0xad1   : > { %v1845_v3 = vadd.f32 1e-05, %v1843_v38  ;;  %v1844_v41 = vmul.f32 0.03125, %v1842_v40 }
 0xad3   : > { %2385 = vrsqrt.f32 %v1845_v3  ;;  %v1846_v43 = vadd.f32 1e-05, %v1844_v41 }
 0xad5   : > { %2387 = vrsqrt.f32 %v1846_v43 }
 0xadd   : > { %v2386_v36 = vpop.eup %2385 }
 0xade   : > { %v1849_v29 = vmul.f32 %v2386_v36, %v1833_v27 }
 0xadf   : > { %v2388_v44 = vpop.eup %2387 }
 0xae0   : > { %v1857_v45 = vmul.f32 %v2025_v4, %v1849_v29  ;;  %v1850_v46 = vmul.f32 %v2388_v44, %v1834_v30 }
 0xae2   : > { %v1865_v47 = vadd.f32 %v2026_v42, %v1857_v45  ;;  %v1858_v48 = vmul.f32 %v2025_v4, %v1850_v46 }
 0xae4   : > { %v1866_v49 = vadd.f32 %v2026_v42, %v1858_v48  ;;  %1867 = vst.msk [vmem:[%s503_s27] sm:$0xff] %vm538_vm1, %v1865_v47 }
 0xae6   : > { %1868 = vst.msk [vmem:[%s503_s27 + $0x8] sm:$0xff] %vm538_vm1, %v1866_v49 }
 0xae7   : > { %2486 = shalt.err (!%p2483_p9)
}
 0xae8   : > { %s2487_s15 = scalar_lea.hbm %s3068_s28, 256  ;;  %s2491_s18 = scalar_lea.hbm %s3166_s25, 512 }
 0xae9   : > { %p2488_p2 = scmp.ne.s32.totalorder %s3068_s28, %s2487_s15  ;;  %p2492_p5 = scmp.lt.u32.totalorder %s3068_s28, %s3166_s25 }
 0xaea   : > { %p2493_p10 = scmp.lt.u32.totalorder %s2491_s18, %s2487_s15  ;;  %p2495_p4 = scmp.lt.u32.totalorder %s2487_s15, %s3068_s28 }
 0xaeb   : > { %p2489_p0 = pnand %p2488_p2, %p3167_p7 }
 0xaec   : > { %p2494_p12 = por %p2493_p10, %p2492_p5 }
 0xaed   : > { %p2490_p3 = pneg %p2489_p0 }
 0xaee   : > { %p2496_p8 = por %p2495_p4, %p2494_p12 }
 0xaf0   : > { %p2497_p11 = pnand %p2496_p8, %p2490_p3 }
 0xaf2   : > { %2500 = shalt.err (!%p2497_p11)
}
 0xaf3   : > { %s2561_s16 = smov 128  }
 0xaf4   : > { %2223 = dma.vmem_to_hbm [thread:$0]  (%p3167_p7), %s3071_s20, 256, %s3068_s28, %s3074_s17, %s2561_s16, %s2561_s16, %s2557_s12  }
 0xaf5 PF: > { %s3168_s22 = sld [smem:[#allocation14_spill]]  ;;  %s3169_s19 = sld [smem:[#allocation12_spill]] }
 0xaf6   : > { %s3170_s13 = sld [smem:[#allocation18_spill]] }
 0xafb   : > { %p2245_p13 = scmp.ge.s32.totalorder %s3168_s22, 2  ;;  %s1898_s14 = sand.u32 1, %s3169_s19  }
 0xafc   : > { %p3171_p1 = scmp.ne.s32.totalorder %s3170_s13, 0  ;;  %s1899_s23 = scalar_lea.sflag [#allocation4], %s1898_s14 }
 0xafe   : > { %p2236_p6 = pnand %p2245_p13, %p3171_p1 }
 0xb00   : > { %2526 = dma.done.wait (!%p2236_p6), %s1899_s23, 256  }
 0xb01   : > { %2528 = vsyncadd (!%p2236_p6), %s1899_s23, 4294967040  ;;  %s3172_s16 = sld [smem:[#allocation15_spill]]  ;;  %s3173_s15 = sld [smem:[#allocation13_spill]] }
 0xb02   : > { %s3174_s21 = sld [smem:[#allocation16_spill]]  ;;  %s3175_s29 = smov %s2535_s30 }
 0xb07   : > { %p26_p9 = scmp.ge.s32.totalorder %s3172_s16, 4   ;;  %s3176_s30 = smov %s3173_s15 }
 0xb08   : > { %s3177_s15 = smov %s3174_s21 }
 0xb09   :  { %28 = sbr.rel (!%p26_p9) target bundleno = 9 (0x9), region = 124 }
 0xb10   :  { %1904 = vsyncpa [#allocation3], 1 }
 0xb11   :  { %1906 = vsyncpa [#allocation3 + $0x1], 1 }
 0xb12   :  { %1907 = vsyncpa [#allocation6], 1 }
 0xb13   :  { %1908 = vsyncpa [#allocation4], 1 }
 0xb14   :  { %1910 = vsyncpa [#allocation4 + $0x1], 1 }

</bundles_post_ra>
